<compile_context>
chip_gen: v7x
topology: tpu7x:2x2x1
jax: 0.10.0
libtpu: 0.0.40
codegen_flags: <defaults>
</compile_context>

<pallas_src>
import functools

import jax
import jax.numpy as jnp
from jax.experimental import pallas as pl
from jax.experimental.pallas import tpu as pltpu

LANES = 128   # lane padding: keeps every matmul / store 128-lane dense
TM1 = 64      # pooled-conv1 output rows per grid step (stacked dot is 4*TM1 rows)


def _round_up(x, m):
    return ((x + m - 1) // m) * m


# ---------------------------------------------------------------------------
# Kernel A: conv1 + ReLU + 2x2 avg pool (0.25 folded into the weight)
# ---------------------------------------------------------------------------
def _conv1_pool_kernel(a_ref, w_ref, o_ref):
    """a_ref: (4*tm, 128) bf16 — the four pool-offset im2col blocks for the
    same tm output rows, stacked along the sublane axis (one weight push).
    w_ref: (128, 128) bf16 conv1 weight with the 0.25 pool scale folded in."""
    tm = o_ref.shape[0]
    r = jnp.dot(a_ref[...], w_ref[...], preferred_element_type=jnp.float32)
    r = jnp.maximum(r, 0.0)
    acc = r[0:tm] + r[tm:2 * tm] + r[2 * tm:3 * tm] + r[3 * tm:4 * tm]
    o_ref[...] = acc.astype(o_ref.dtype)


def conv1_relu_pool(a1, w1, m_valid, tm=TM1):
    rows, kp = a1.shape
    nblocks = rows // (4 * tm)
    out = pl.pallas_call(
        _conv1_pool_kernel,
        out_shape=jax.ShapeDtypeStruct((nblocks * tm, LANES), jnp.bfloat16),
        grid=(nblocks,),
        in_specs=[pl.BlockSpec((4 * tm, kp), lambda i: (i, 0)),
                  pl.BlockSpec((kp, LANES), lambda i: (0, 0))],
        out_specs=pl.BlockSpec((tm, LANES), lambda i: (i, 0)),
        compiler_params=pltpu.CompilerParams(
            dimension_semantics=("parallel",)),
    )(a1, w1)
    return out[:m_valid]


# ---------------------------------------------------------------------------
# Kernel B: conv2 + ReLU + pool + conv3 + ReLU + fc1, fully fused in VMEM
# ---------------------------------------------------------------------------
def _tail_kernel(a2_ref, w2_ref, w3_ref, fcw_ref, o_ref, p2_sc, a3_sc, *, n):
    m2 = n * 36                       # rows of the pooled conv2 activation

    # ---- conv2 + ReLU + 2x2 avg pool (0.25 folded into w2) ----------------
    w2 = w2_ref[...]
    ra = jnp.maximum(jnp.dot(a2_ref[0:2 * m2, :], w2,
                             preferred_element_type=jnp.float32), 0.0)
    rb = jnp.maximum(jnp.dot(a2_ref[2 * m2:4 * m2, :], w2,
                             preferred_element_type=jnp.float32), 0.0)
    pooled = ra[0:m2] + ra[m2:2 * m2] + rb[0:m2] + rb[m2:2 * m2]
    p2_sc[...] = jnp.zeros_like(p2_sc)          # zero pad rows (harmless taps)
    p2_sc[pl.ds(0, m2), :] = pooled             # rows = n*36 + ph*6 + pw

    # ---- conv3 (3x3, 16->32) as 9 shifted matmuls + ReLU ------------------
    # out(n,h,w) += pooled2(n, h+kh, w+kw) @ W3[kh,kw]; a row shift of kh*6+kw.
    # Rows with h>=4 or w>=4 are garbage and are never read by fc1.
    acc3 = jnp.zeros((m2, LANES), jnp.float32)
    for kh in range(3):
        for kw in range(3):
            lhs = p2_sc[pl.ds(kh * 6 + kw, m2), :].astype(jnp.bfloat16)
            acc3 = acc3 + jnp.dot(lhs, w3_ref[kh * 3 + kw],
                                  preferred_element_type=jnp.float32)
    a3_sc[...] = jnp.zeros_like(a3_sc)          # rows >= m2 stay zero
    a3_sc[pl.ds(0, m2), :] = jnp.maximum(acc3, 0.0)

    # ---- fc1: sum over the 16 valid conv3 positions ------------------------
    # For position p=(h,w): rows {p_row, p_row+36, ...} (stride 36) are the
    # per-image activations (zero rows beyond the batch contribute nothing).
    accf = jnp.zeros((8, LANES), jnp.float32)
    for h in range(4):
        for w in range(4):
            rows = a3_sc[pl.ds(h * 6 + w, 8, stride=36), :].astype(jnp.bfloat16)
            accf = accf + jnp.dot(rows, fcw_ref[h * 4 + w],
                                  preferred_element_type=jnp.float32)
    o_ref[...] = accf


def conv2_conv3_fc_fused(a2, w2, w3, fcw, n):
    assert n <= 8, "fused fc1 path assumes batch <= 8"
    m2 = n * 36
    out = pl.pallas_call(
        functools.partial(_tail_kernel, n=n),
        out_shape=jax.ShapeDtypeStruct((8, LANES), jnp.float32),
        grid=(1,),
        in_specs=[pl.BlockSpec((4 * m2, LANES), lambda i: (0, 0)),
                  pl.BlockSpec((LANES, LANES), lambda i: (0, 0)),
                  pl.BlockSpec((9, LANES, LANES), lambda i: (0, 0, 0)),
                  pl.BlockSpec((16, LANES, LANES), lambda i: (0, 0, 0))],
        out_specs=pl.BlockSpec((8, LANES), lambda i: (0, 0)),
        scratch_shapes=[
            pltpu.VMEM((_round_up(m2 + 15, 8), LANES), jnp.float32),  # pooled2
            pltpu.VMEM((8 * 36, LANES), jnp.float32),                 # act3
        ],
        compiler_params=pltpu.CompilerParams(
            dimension_semantics=("arbitrary",)),
    )(a2, w2, w3, fcw)
    return out[:n, :10]


# ---------------------------------------------------------------------------
# NHWC-native im2col glue (taps ordered (kh, kw, c)); pooling offsets fused
# ---------------------------------------------------------------------------
def _im2col_pooled(x, khw, kp):
    """x: (N, H, W, C). Returns 4 patch matrices (N*PH*PW, kp), one per 2x2
    pooling offset, zero-padded to kp lanes via the same concatenate."""
    N, H, W, C = x.shape
    KH, KW = khw
    OH, OW = H - KH + 1, W - KW + 1
    PH, PW = OH // 2, OW // 2
    K = KH * KW * C
    pad = jnp.zeros((N, PH, PW, kp - K), x.dtype) if kp > K else None
    outs = []
    for i in (0, 1):
        for j in (0, 1):
            taps = [x[:, i + kh: i + kh + 2 * PH: 2,
                       j + kw: j + kw + 2 * PW: 2, :]
                    for kh in range(KH) for kw in range(KW)]
            if pad is not None:
                taps.append(pad)
            outs.append(jnp.concatenate(taps, axis=-1).reshape(N * PH * PW, kp))
    return outs, (PH, PW)


def _stack_conv1_patches(patches, tm):
    """Interleave the 4 offset patch matrices along M into ONE buffer so the
    kernel sees the 4 blocks for the same tm output rows contiguously."""
    m, kp = patches[0].shape
    mp = _round_up(m, tm)
    nblocks = mp // tm
    padded = [jnp.pad(p, ((0, mp - m), (0, 0))) if mp > m else p
              for p in patches]
    stacked = jnp.stack(padded, axis=0)                       # (4, mp, kp)
    a1 = (stacked.reshape(4, nblocks, tm, kp)
                 .transpose(1, 0, 2, 3)
                 .reshape(nblocks * 4 * tm, kp))
    return a1


# ---------------------------------------------------------------------------
# Parameters: random init (PyTorch layout) + one-time preprocessing
# ---------------------------------------------------------------------------
def init_params(key):
    k1, k2, k3, k4 = jax.random.split(key, 4)

    def he(k, shape, fan_in):
        return jax.random.normal(k, shape, jnp.float32) * jnp.sqrt(2.0 / fan_in)

    return {
        "conv1": he(k1, (8, 3, 5, 5), 3 * 5 * 5),
        "conv2": he(k2, (16, 8, 3, 3), 8 * 3 * 3),
        "conv3": he(k3, (32, 16, 3, 3), 16 * 3 * 3),
        "fc1":   he(k4, (10, 4 * 4 * 32), 4 * 4 * 32),
    }


def prepare_params(params):
    """One-time weight prep (not per forward)."""
    def prep_conv_im2col(w, scale):
        oc, c, kh, kw = w.shape
        k = kh * kw * c
        w2 = (w.transpose(2, 3, 1, 0).reshape(k, oc) * scale).astype(jnp.bfloat16)
        return jnp.zeros((LANES, LANES), jnp.bfloat16).at[:k, :oc].set(w2)

    # conv3 as 9 per-tap (c_in, c_out) blocks for the shifted-matmul form.
    w3 = params["conv3"]                                       # (32, 16, 3, 3)
    w3t = w3.transpose(2, 3, 1, 0).reshape(9, 16, 32).astype(jnp.bfloat16)
    w3p = jnp.zeros((9, LANES, LANES), jnp.bfloat16).at[:, :16, :32].set(w3t)

    # fc1 as 16 per-position (c, o) blocks; rows follow torch NCHW flatten.
    wfc = params["fc1"]                                        # (10, 512)
    wfc_r = (wfc.reshape(10, 32, 4, 4)                         # (o, c, h, w)
                .transpose(2, 3, 1, 0)                         # (h, w, c, o)
                .reshape(16, 32, 10)
                .astype(jnp.bfloat16))
    wfc_p = jnp.zeros((16, LANES, LANES), jnp.bfloat16).at[:, :32, :10].set(wfc_r)

    return {
        "conv1": prep_conv_im2col(params["conv1"], 0.25),   # pool scale folded
        "conv2": prep_conv_im2col(params["conv2"], 0.25),   # pool scale folded
        "conv3": w3p,
        "fc1": wfc_p,
    }


# ---------------------------------------------------------------------------
# ExampleNet forward: 2 pallas_calls total
# ---------------------------------------------------------------------------
@jax.jit
def example_net_forward(x_nchw, prep):
    """x_nchw: (N, 3, 32, 32) fp32 (PyTorch NCHW). Returns (N, 10) fp32."""
    n = x_nchw.shape[0]
    x = x_nchw.transpose(0, 2, 3, 1).astype(jnp.bfloat16)       # NHWC bf16

    # conv1 (5x5, 3->8) + ReLU + 2x2 avg pool : one fused pallas_call
    p1, (ph, pw) = _im2col_pooled(x, (5, 5), LANES)
    a1 = _stack_conv1_patches(p1, TM1)
    y1 = conv1_relu_pool(a1, prep["conv1"], n * ph * pw)        # (n*196, 128)

    # conv2+ReLU+pool + conv3+ReLU + fc1 : one fused pallas_call
    h1 = y1.reshape(n, ph, pw, LANES)[..., :8]                  # (n, 14, 14, 8)
    p2, _ = _im2col_pooled(h1, (3, 3), LANES)
    a2 = jnp.concatenate(p2, axis=0)                            # (4*n*36, 128)
    logits = conv2_conv3_fc_fused(a2, prep["conv2"], prep["conv3"],
                                  prep["fc1"], n)
    return logits


if __name__ == "__main__":
    key = jax.random.PRNGKey(0)
    k_params, k_x = jax.random.split(key)
    params = init_params(k_params)
    prep = prepare_params(params)

    # Input spatial size must be 32x32 so the flattened feature is 4*4*32=512.
    x = jax.random.normal(k_x, (2, 3, 32, 32), jnp.float32)

    logits = example_net_forward(x, prep)
    jax.block_until_ready(logits)
    assert logits.shape == (2, 10), logits.shape
    assert bool(jnp.all(jnp.isfinite(logits)))
    print("KERNEL_OK")
</pallas_src>

<mosaic_0001>
module attributes {stable_mosaic.version = 11 : i64} {
  func.func @_conv1_pool_kernel(%arg0: i32, %arg1: memref<256x128xbf16, #tpu.memory_space<vmem>>, %arg2: memref<128x128xbf16, #tpu.memory_space<vmem>>, %arg3: memref<64x128xbf16, #tpu.memory_space<vmem>>) attributes {dimension_semantics = [#tpu.dimension_semantics<parallel>], iteration_bounds = array<i64: 7>, scalar_prefetch = 0 : i64, scratch_operands = 0 : i64, tpu.core_type = #tpu.core_type<tc>, window_params = [{transform_indices = @transform_0, window_bounds = array<i64: 256, 128>}, {pipeline_mode = #tpu.pipeline_mode<synchronous>, transform_indices = @transform_1, window_bounds = array<i64: 128, 128>}, {transform_indices = @transform_2, window_bounds = array<i64: 64, 128>}]} {
    %c0 = arith.constant 0 : index
    %c0_0 = arith.constant 0 : index
    %0 = vector.load %arg1[%c0, %c0_0] : memref<256x128xbf16, #tpu.memory_space<vmem>>, vector<256x128xbf16>
    %c0_1 = arith.constant 0 : index
    %c0_2 = arith.constant 0 : index
    %1 = vector.load %arg2[%c0_1, %c0_2] : memref<128x128xbf16, #tpu.memory_space<vmem>>, vector<128x128xbf16>
    %cst = arith.constant dense<0.000000e+00> : vector<256x128xf32>
    %2 = tpu.matmul %0, %1, %cst {dimension_numbers = #tpu.dot_dimension_numbers<[1], [0], [0], [1], [0, 0, 1, 1], [], []>} : vector<256x128xbf16>, vector<128x128xbf16>, vector<256x128xf32> -> vector<256x128xf32>
    %cst_3 = arith.constant 0.000000e+00 : f32
    %3 = vector.broadcast %cst_3 : f32 to vector<256x128xf32>
    %4 = arith.maximumf %2, %3 : vector<256x128xf32>
    %5 = vector.extract_strided_slice %4 {offsets = [0, 0], sizes = [64, 128], strides = [1, 1]} : vector<256x128xf32> to vector<64x128xf32>
    %6 = vector.extract_strided_slice %4 {offsets = [64, 0], sizes = [64, 128], strides = [1, 1]} : vector<256x128xf32> to vector<64x128xf32>
    %7 = arith.addf %5, %6 : vector<64x128xf32>
    %8 = vector.extract_strided_slice %4 {offsets = [128, 0], sizes = [64, 128], strides = [1, 1]} : vector<256x128xf32> to vector<64x128xf32>
    %9 = arith.addf %7, %8 : vector<64x128xf32>
    %10 = vector.extract_strided_slice %4 {offsets = [192, 0], sizes = [64, 128], strides = [1, 1]} : vector<256x128xf32> to vector<64x128xf32>
    %11 = arith.addf %9, %10 : vector<64x128xf32>
    %12 = arith.truncf %11 : vector<64x128xf32> to vector<64x128xbf16>
    %c0_4 = arith.constant 0 : index
    %c0_5 = arith.constant 0 : index
    %13 = vector.load %arg3[%c0_4, %c0_5] : memref<64x128xbf16, #tpu.memory_space<vmem>>, vector<64x128xbf16>
    tpu.vector_store %arg3[%c0_4, %c0_5], %12 {strides = array<i32>} : memref<64x128xbf16, #tpu.memory_space<vmem>>, vector<64x128xbf16>,
    return
  }
  func.func @transform_0(%arg0: i32) -> (i32, i32) {
    %c0_i32 = arith.constant 0 : i32
    %c0_i32_0 = arith.constant 0 : i32
    return %arg0, %c0_i32 : i32, i32
  }
  func.func @transform_1(%arg0: i32) -> (i32, i32) {
    %c0_i32 = arith.constant 0 : i32
    %c0_i32_0 = arith.constant 0 : i32
    %c0_i32_1 = arith.constant 0 : i32
    return %c0_i32, %c0_i32_0 : i32, i32
  }
  func.func @transform_2(%arg0: i32) -> (i32, i32) {
    %c0_i32 = arith.constant 0 : i32
    %c0_i32_0 = arith.constant 0 : i32
    return %arg0, %c0_i32 : i32, i32
  }
}

module attributes {stable_mosaic.version = 11 : i64} {
  func.func @_tail_kernel(%arg0: i32, %arg1: memref<288x128xbf16, #tpu.memory_space<vmem>>, %arg2: memref<128x128xbf16, #tpu.memory_space<vmem>>, %arg3: memref<9x128x128xbf16, #tpu.memory_space<vmem>>, %arg4: memref<16x128x128xbf16, #tpu.memory_space<vmem>>, %arg5: memref<8x128xf32, #tpu.memory_space<vmem>>, %arg6: memref<88x128xf32, #tpu.memory_space<vmem>>, %arg7: memref<288x128xf32, #tpu.memory_space<vmem>>) attributes {dimension_semantics = [#tpu.dimension_semantics<arbitrary>], iteration_bounds = array<i64: 1>, scalar_prefetch = 0 : i64, scratch_operands = 2 : i64, tpu.core_type = #tpu.core_type<tc>, window_params = [{pipeline_mode = #tpu.pipeline_mode<synchronous>, transform_indices = @transform_0, window_bounds = array<i64: 288, 128>}, {pipeline_mode = #tpu.pipeline_mode<synchronous>, transform_indices = @transform_1, window_bounds = array<i64: 128, 128>}, {pipeline_mode = #tpu.pipeline_mode<synchronous>, transform_indices = @transform_2, window_bounds = array<i64: 9, 128, 128>}, {pipeline_mode = #tpu.pipeline_mode<synchronous>, transform_indices = @transform_3, window_bounds = array<i64: 16, 128, 128>}, {pipeline_mode = #tpu.pipeline_mode<synchronous>, transform_indices = @transform_4, window_bounds = array<i64: 8, 128>}]} {
    %c0 = arith.constant 0 : index
    %c0_0 = arith.constant 0 : index
    %0 = vector.load %arg2[%c0, %c0_0] : memref<128x128xbf16, #tpu.memory_space<vmem>>, vector<128x128xbf16>
    %c0_1 = arith.constant 0 : index
    %c0_2 = arith.constant 0 : index
    %1 = vector.load %arg1[%c0_1, %c0_2] : memref<288x128xbf16, #tpu.memory_space<vmem>>, vector<144x128xbf16>
    %cst = arith.constant dense<0.000000e+00> : vector<144x128xf32>
    %2 = tpu.matmul %1, %0, %cst {dimension_numbers = #tpu.dot_dimension_numbers<[1], [0], [0], [1], [0, 0, 1, 1], [], []>} : vector<144x128xbf16>, vector<128x128xbf16>, vector<144x128xf32> -> vector<144x128xf32>
    %cst_3 = arith.constant 0.000000e+00 : f32
    %3 = vector.broadcast %cst_3 : f32 to vector<144x128xf32>
    %4 = arith.maximumf %2, %3 : vector<144x128xf32>
    %c144 = arith.constant 144 : index
    %c0_4 = arith.constant 0 : index
    %5 = vector.load %arg1[%c144, %c0_4] : memref<288x128xbf16, #tpu.memory_space<vmem>>, vector<144x128xbf16>
    %cst_5 = arith.constant dense<0.000000e+00> : vector<144x128xf32>
    %6 = tpu.matmul %5, %0, %cst_5 {dimension_numbers = #tpu.dot_dimension_numbers<[1], [0], [0], [1], [0, 0, 1, 1], [], []>} : vector<144x128xbf16>, vector<128x128xbf16>, vector<144x128xf32> -> vector<144x128xf32>
    %cst_6 = arith.constant 0.000000e+00 : f32
    %7 = vector.broadcast %cst_6 : f32 to vector<144x128xf32>
    %8 = arith.maximumf %6, %7 : vector<144x128xf32>
    %9 = vector.extract_strided_slice %4 {offsets = [0, 0], sizes = [72, 128], strides = [1, 1]} : vector<144x128xf32> to vector<72x128xf32>
    %10 = vector.extract_strided_slice %4 {offsets = [72, 0], sizes = [72, 128], strides = [1, 1]} : vector<144x128xf32> to vector<72x128xf32>
    %11 = arith.addf %9, %10 : vector<72x128xf32>
    %12 = vector.extract_strided_slice %8 {offsets = [0, 0], sizes = [72, 128], strides = [1, 1]} : vector<144x128xf32> to vector<72x128xf32>
    %13 = arith.addf %11, %12 : vector<72x128xf32>
    %14 = vector.extract_strided_slice %8 {offsets = [72, 0], sizes = [72, 128], strides = [1, 1]} : vector<144x128xf32> to vector<72x128xf32>
    %15 = arith.addf %13, %14 : vector<72x128xf32>
    %cst_7 = arith.constant 0.000000e+00 : f32
    %16 = vector.broadcast %cst_7 : f32 to vector<88x128xf32>
    %c0_8 = arith.constant 0 : index
    %c0_9 = arith.constant 0 : index
    %17 = vector.load %arg6[%c0_8, %c0_9] : memref<88x128xf32, #tpu.memory_space<vmem>>, vector<88x128xf32>
    tpu.vector_store %arg6[%c0_8, %c0_9], %16 {strides = array<i32>} : memref<88x128xf32, #tpu.memory_space<vmem>>, vector<88x128xf32>,
    %c0_10 = arith.constant 0 : index
    %c0_11 = arith.constant 0 : index
    %18 = vector.load %arg6[%c0_10, %c0_11] : memref<88x128xf32, #tpu.memory_space<vmem>>, vector<72x128xf32>
    tpu.vector_store %arg6[%c0_10, %c0_11], %15 {strides = array<i32>} : memref<88x128xf32, #tpu.memory_space<vmem>>, vector<72x128xf32>,
    %cst_12 = arith.constant 0.000000e+00 : f32
    %19 = vector.broadcast %cst_12 : f32 to vector<72x128xf32>
    %c0_13 = arith.constant 0 : index
    %c0_14 = arith.constant 0 : index
    %20 = vector.load %arg6[%c0_13, %c0_14] : memref<88x128xf32, #tpu.memory_space<vmem>>, vector<72x128xf32>
    %21 = arith.truncf %20 : vector<72x128xf32> to vector<72x128xbf16>
    %c0_15 = arith.constant 0 : index
    %c0_16 = arith.constant 0 : index
    %c0_17 = arith.constant 0 : index
    %22 = vector.load %arg3[%c0_15, %c0_16, %c0_17] : memref<9x128x128xbf16, #tpu.memory_space<vmem>>, vector<1x128x128xbf16>
    %23 = vector.shape_cast %22 : vector<1x128x128xbf16> to vector<128x128xbf16>
    %cst_18 = arith.constant dense<0.000000e+00> : vector<72x128xf32>
    %24 = tpu.matmul %21, %23, %cst_18 {dimension_numbers = #tpu.dot_dimension_numbers<[1], [0], [0], [1], [0, 0, 1, 1], [], []>} : vector<72x128xbf16>, vector<128x128xbf16>, vector<72x128xf32> -> vector<72x128xf32>
    %25 = arith.addf %19, %24 : vector<72x128xf32>
    %c1 = arith.constant 1 : index
    %c0_19 = arith.constant 0 : index
    %26 = vector.load %arg6[%c1, %c0_19] : memref<88x128xf32, #tpu.memory_space<vmem>>, vector<72x128xf32>
    %27 = arith.truncf %26 : vector<72x128xf32> to vector<72x128xbf16>
    %c1_20 = arith.constant 1 : index
    %c0_21 = arith.constant 0 : index
    %c0_22 = arith.constant 0 : index
    %28 = vector.load %arg3[%c1_20, %c0_21, %c0_22] : memref<9x128x128xbf16, #tpu.memory_space<vmem>>, vector<1x128x128xbf16>
    %29 = vector.shape_cast %28 : vector<1x128x128xbf16> to vector<128x128xbf16>
    %cst_23 = arith.constant dense<0.000000e+00> : vector<72x128xf32>
    %30 = tpu.matmul %27, %29, %cst_23 {dimension_numbers = #tpu.dot_dimension_numbers<[1], [0], [0], [1], [0, 0, 1, 1], [], []>} : vector<72x128xbf16>, vector<128x128xbf16>, vector<72x128xf32> -> vector<72x128xf32>
    %31 = arith.addf %25, %30 : vector<72x128xf32>
    %c2 = arith.constant 2 : index
    %c0_24 = arith.constant 0 : index
    %32 = vector.load %arg6[%c2, %c0_24] : memref<88x128xf32, #tpu.memory_space<vmem>>, vector<72x128xf32>
    %33 = arith.truncf %32 : vector<72x128xf32> to vector<72x128xbf16>
    %c2_25 = arith.constant 2 : index
    %c0_26 = arith.constant 0 : index
    %c0_27 = arith.constant 0 : index
    %34 = vector.load %arg3[%c2_25, %c0_26, %c0_27] : memref<9x128x128xbf16, #tpu.memory_space<vmem>>, vector<1x128x128xbf16>
    %35 = vector.shape_cast %34 : vector<1x128x128xbf16> to vector<128x128xbf16>
    %cst_28 = arith.constant dense<0.000000e+00> : vector<72x128xf32>
    %36 = tpu.matmul %33, %35, %cst_28 {dimension_numbers = #tpu.dot_dimension_numbers<[1], [0], [0], [1], [0, 0, 1, 1], [], []>} : vector<72x128xbf16>, vector<128x128xbf16>, vector<72x128xf32> -> vector<72x128xf32>
    %37 = arith.addf %31, %36 : vector<72x128xf32>
    %c6 = arith.constant 6 : index
    %c0_29 = arith.constant 0 : index
    %38 = vector.load %arg6[%c6, %c0_29] : memref<88x128xf32, #tpu.memory_space<vmem>>, vector<72x128xf32>
    %39 = arith.truncf %38 : vector<72x128xf32> to vector<72x128xbf16>
    %c3 = arith.constant 3 : index
    %c0_30 = arith.constant 0 : index
    %c0_31 = arith.constant 0 : index
    %40 = vector.load %arg3[%c3, %c0_30, %c0_31] : memref<9x128x128xbf16, #tpu.memory_space<vmem>>, vector<1x128x128xbf16>
    %41 = vector.shape_cast %40 : vector<1x128x128xbf16> to vector<128x128xbf16>
    %cst_32 = arith.constant dense<0.000000e+00> : vector<72x128xf32>
    %42 = tpu.matmul %39, %41, %cst_32 {dimension_numbers = #tpu.dot_dimension_numbers<[1], [0], [0], [1], [0, 0, 1, 1], [], []>} : vector<72x128xbf16>, vector<128x128xbf16>, vector<72x128xf32> -> vector<72x128xf32>
    %43 = arith.addf %37, %42 : vector<72x128xf32>
    %c7 = arith.constant 7 : index
    %c0_33 = arith.constant 0 : index
    %44 = vector.load %arg6[%c7, %c0_33] : memref<88x128xf32, #tpu.memory_space<vmem>>, vector<72x128xf32>
    %45 = arith.truncf %44 : vector<72x128xf32> to vector<72x128xbf16>
    %c4 = arith.constant 4 : index
    %c0_34 = arith.constant 0 : index
    %c0_35 = arith.constant 0 : index
    %46 = vector.load %arg3[%c4, %c0_34, %c0_35] : memref<9x128x128xbf16, #tpu.memory_space<vmem>>, vector<1x128x128xbf16>
    %47 = vector.shape_cast %46 : vector<1x128x128xbf16> to vector<128x128xbf16>
    %cst_36 = arith.constant dense<0.000000e+00> : vector<72x128xf32>
    %48 = tpu.matmul %45, %47, %cst_36 {dimension_numbers = #tpu.dot_dimension_numbers<[1], [0], [0], [1], [0, 0, 1, 1], [], []>} : vector<72x128xbf16>, vector<128x128xbf16>, vector<72x128xf32> -> vector<72x128xf32>
    %49 = arith.addf %43, %48 : vector<72x128xf32>
    %c8 = arith.constant 8 : index
    %c0_37 = arith.constant 0 : index
    %50 = vector.load %arg6[%c8, %c0_37] : memref<88x128xf32, #tpu.memory_space<vmem>>, vector<72x128xf32>
    %51 = arith.truncf %50 : vector<72x128xf32> to vector<72x128xbf16>
    %c5 = arith.constant 5 : index
    %c0_38 = arith.constant 0 : index
    %c0_39 = arith.constant 0 : index
    %52 = vector.load %arg3[%c5, %c0_38, %c0_39] : memref<9x128x128xbf16, #tpu.memory_space<vmem>>, vector<1x128x128xbf16>
    %53 = vector.shape_cast %52 : vector<1x128x128xbf16> to vector<128x128xbf16>
    %cst_40 = arith.constant dense<0.000000e+00> : vector<72x128xf32>
    %54 = tpu.matmul %51, %53, %cst_40 {dimension_numbers = #tpu.dot_dimension_numbers<[1], [0], [0], [1], [0, 0, 1, 1], [], []>} : vector<72x128xbf16>, vector<128x128xbf16>, vector<72x128xf32> -> vector<72x128xf32>
    %55 = arith.addf %49, %54 : vector<72x128xf32>
    %c12 = arith.constant 12 : index
    %c0_41 = arith.constant 0 : index
    %56 = vector.load %arg6[%c12, %c0_41] : memref<88x128xf32, #tpu.memory_space<vmem>>, vector<72x128xf32>
    %57 = arith.truncf %56 : vector<72x128xf32> to vector<72x128xbf16>
    %c6_42 = arith.constant 6 : index
    %c0_43 = arith.constant 0 : index
    %c0_44 = arith.constant 0 : index
    %58 = vector.load %arg3[%c6_42, %c0_43, %c0_44] : memref<9x128x128xbf16, #tpu.memory_space<vmem>>, vector<1x128x128xbf16>
    %59 = vector.shape_cast %58 : vector<1x128x128xbf16> to vector<128x128xbf16>
    %cst_45 = arith.constant dense<0.000000e+00> : vector<72x128xf32>
    %60 = tpu.matmul %57, %59, %cst_45 {dimension_numbers = #tpu.dot_dimension_numbers<[1], [0], [0], [1], [0, 0, 1, 1], [], []>} : vector<72x128xbf16>, vector<128x128xbf16>, vector<72x128xf32> -> vector<72x128xf32>
    %61 = arith.addf %55, %60 : vector<72x128xf32>
    %c13 = arith.constant 13 : index
    %c0_46 = arith.constant 0 : index
    %62 = vector.load %arg6[%c13, %c0_46] : memref<88x128xf32, #tpu.memory_space<vmem>>, vector<72x128xf32>
    %63 = arith.truncf %62 : vector<72x128xf32> to vector<72x128xbf16>
    %c7_47 = arith.constant 7 : index
    %c0_48 = arith.constant 0 : index
    %c0_49 = arith.constant 0 : index
    %64 = vector.load %arg3[%c7_47, %c0_48, %c0_49] : memref<9x128x128xbf16, #tpu.memory_space<vmem>>, vector<1x128x128xbf16>
    %65 = vector.shape_cast %64 : vector<1x128x128xbf16> to vector<128x128xbf16>
    %cst_50 = arith.constant dense<0.000000e+00> : vector<72x128xf32>
    %66 = tpu.matmul %63, %65, %cst_50 {dimension_numbers = #tpu.dot_dimension_numbers<[1], [0], [0], [1], [0, 0, 1, 1], [], []>} : vector<72x128xbf16>, vector<128x128xbf16>, vector<72x128xf32> -> vector<72x128xf32>
    %67 = arith.addf %61, %66 : vector<72x128xf32>
    %c14 = arith.constant 14 : index
    %c0_51 = arith.constant 0 : index
    %68 = vector.load %arg6[%c14, %c0_51] : memref<88x128xf32, #tpu.memory_space<vmem>>, vector<72x128xf32>
    %69 = arith.truncf %68 : vector<72x128xf32> to vector<72x128xbf16>
    %c8_52 = arith.constant 8 : index
    %c0_53 = arith.constant 0 : index
    %c0_54 = arith.constant 0 : index
    %70 = vector.load %arg3[%c8_52, %c0_53, %c0_54] : memref<9x128x128xbf16, #tpu.memory_space<vmem>>, vector<1x128x128xbf16>
    %71 = vector.shape_cast %70 : vector<1x128x128xbf16> to vector<128x128xbf16>
    %cst_55 = arith.constant dense<0.000000e+00> : vector<72x128xf32>
    %72 = tpu.matmul %69, %71, %cst_55 {dimension_numbers = #tpu.dot_dimension_numbers<[1], [0], [0], [1], [0, 0, 1, 1], [], []>} : vector<72x128xbf16>, vector<128x128xbf16>, vector<72x128xf32> -> vector<72x128xf32>
    %73 = arith.addf %67, %72 : vector<72x128xf32>
    %cst_56 = arith.constant 0.000000e+00 : f32
    %74 = vector.broadcast %cst_56 : f32 to vector<288x128xf32>
    %c0_57 = arith.constant 0 : index
    %c0_58 = arith.constant 0 : index
    %75 = vector.load %arg7[%c0_57, %c0_58] : memref<288x128xf32, #tpu.memory_space<vmem>>, vector<288x128xf32>
    tpu.vector_store %arg7[%c0_57, %c0_58], %74 {strides = array<i32>} : memref<288x128xf32, #tpu.memory_space<vmem>>, vector<288x128xf32>,
    %cst_59 = arith.constant 0.000000e+00 : f32
    %76 = vector.broadcast %cst_59 : f32 to vector<72x128xf32>
    %77 = arith.maximumf %73, %76 : vector<72x128xf32>
    %c0_60 = arith.constant 0 : index
    %c0_61 = arith.constant 0 : index
    %78 = vector.load %arg7[%c0_60, %c0_61] : memref<288x128xf32, #tpu.memory_space<vmem>>, vector<72x128xf32>
    tpu.vector_store %arg7[%c0_60, %c0_61], %77 {strides = array<i32>} : memref<288x128xf32, #tpu.memory_space<vmem>>, vector<72x128xf32>,
    %cst_62 = arith.constant 0.000000e+00 : f32
    %79 = vector.broadcast %cst_62 : f32 to vector<8x128xf32>
    %c0_63 = arith.constant 0 : index
    %c0_64 = arith.constant 0 : index
    %80 = tpu.strided_load %arg7[%c0_63, %c0_64] {strides = array<i32: 36, 1>} : memref<288x128xf32, #tpu.memory_space<vmem>>, vector<8x128xf32>
    %81 = arith.truncf %80 : vector<8x128xf32> to vector<8x128xbf16>
    %c0_65 = arith.constant 0 : index
    %c0_66 = arith.constant 0 : index
    %c0_67 = arith.constant 0 : index
    %82 = vector.load %arg4[%c0_65, %c0_66, %c0_67] : memref<16x128x128xbf16, #tpu.memory_space<vmem>>, vector<1x128x128xbf16>
    %83 = vector.shape_cast %82 : vector<1x128x128xbf16> to vector<128x128xbf16>
    %cst_68 = arith.constant dense<0.000000e+00> : vector<8x128xf32>
    %84 = tpu.matmul %81, %83, %cst_68 {dimension_numbers = #tpu.dot_dimension_numbers<[1], [0], [0], [1], [0, 0, 1, 1], [], []>} : vector<8x128xbf16>, vector<128x128xbf16>, vector<8x128xf32> -> vector<8x128xf32>
    %85 = arith.addf %79, %84 : vector<8x128xf32>
    %c1_69 = arith.constant 1 : index
    %c0_70 = arith.constant 0 : index
    %86 = tpu.strided_load %arg7[%c1_69, %c0_70] {strides = array<i32: 36, 1>} : memref<288x128xf32, #tpu.memory_space<vmem>>, vector<8x128xf32>
    %87 = arith.truncf %86 : vector<8x128xf32> to vector<8x128xbf16>
    %c1_71 = arith.constant 1 : index
    %c0_72 = arith.constant 0 : index
    %c0_73 = arith.constant 0 : index
    %88 = vector.load %arg4[%c1_71, %c0_72, %c0_73] : memref<16x128x128xbf16, #tpu.memory_space<vmem>>, vector<1x128x128xbf16>
    %89 = vector.shape_cast %88 : vector<1x128x128xbf16> to vector<128x128xbf16>
    %cst_74 = arith.constant dense<0.000000e+00> : vector<8x128xf32>
    %90 = tpu.matmul %87, %89, %cst_74 {dimension_numbers = #tpu.dot_dimension_numbers<[1], [0], [0], [1], [0, 0, 1, 1], [], []>} : vector<8x128xbf16>, vector<128x128xbf16>, vector<8x128xf32> -> vector<8x128xf32>
    %91 = arith.addf %85, %90 : vector<8x128xf32>
    %c2_75 = arith.constant 2 : index
    %c0_76 = arith.constant 0 : index
    %92 = tpu.strided_load %arg7[%c2_75, %c0_76] {strides = array<i32: 36, 1>} : memref<288x128xf32, #tpu.memory_space<vmem>>, vector<8x128xf32>
    %93 = arith.truncf %92 : vector<8x128xf32> to vector<8x128xbf16>
    %c2_77 = arith.constant 2 : index
    %c0_78 = arith.constant 0 : index
    %c0_79 = arith.constant 0 : index
    %94 = vector.load %arg4[%c2_77, %c0_78, %c0_79] : memref<16x128x128xbf16, #tpu.memory_space<vmem>>, vector<1x128x128xbf16>
    %95 = vector.shape_cast %94 : vector<1x128x128xbf16> to vector<128x128xbf16>
    %cst_80 = arith.constant dense<0.000000e+00> : vector<8x128xf32>
    %96 = tpu.matmul %93, %95, %cst_80 {dimension_numbers = #tpu.dot_dimension_numbers<[1], [0], [0], [1], [0, 0, 1, 1], [], []>} : vector<8x128xbf16>, vector<128x128xbf16>, vector<8x128xf32> -> vector<8x128xf32>
    %97 = arith.addf %91, %96 : vector<8x128xf32>
    %c3_81 = arith.constant 3 : index
    %c0_82 = arith.constant 0 : index
    %98 = tpu.strided_load %arg7[%c3_81, %c0_82] {strides = array<i32: 36, 1>} : memref<288x128xf32, #tpu.memory_space<vmem>>, vector<8x128xf32>
    %99 = arith.truncf %98 : vector<8x128xf32> to vector<8x128xbf16>
    %c3_83 = arith.constant 3 : index
    %c0_84 = arith.constant 0 : index
    %c0_85 = arith.constant 0 : index
    %100 = vector.load %arg4[%c3_83, %c0_84, %c0_85] : memref<16x128x128xbf16, #tpu.memory_space<vmem>>, vector<1x128x128xbf16>
    %101 = vector.shape_cast %100 : vector<1x128x128xbf16> to vector<128x128xbf16>
    %cst_86 = arith.constant dense<0.000000e+00> : vector<8x128xf32>
    %102 = tpu.matmul %99, %101, %cst_86 {dimension_numbers = #tpu.dot_dimension_numbers<[1], [0], [0], [1], [0, 0, 1, 1], [], []>} : vector<8x128xbf16>, vector<128x128xbf16>, vector<8x128xf32> -> vector<8x128xf32>
    %103 = arith.addf %97, %102 : vector<8x128xf32>
    %c6_87 = arith.constant 6 : index
    %c0_88 = arith.constant 0 : index
    %104 = tpu.strided_load %arg7[%c6_87, %c0_88] {strides = array<i32: 36, 1>} : memref<288x128xf32, #tpu.memory_space<vmem>>, vector<8x128xf32>
    %105 = arith.truncf %104 : vector<8x128xf32> to vector<8x128xbf16>
    %c4_89 = arith.constant 4 : index
    %c0_90 = arith.constant 0 : index
    %c0_91 = arith.constant 0 : index
    %106 = vector.load %arg4[%c4_89, %c0_90, %c0_91] : memref<16x128x128xbf16, #tpu.memory_space<vmem>>, vector<1x128x128xbf16>
    %107 = vector.shape_cast %106 : vector<1x128x128xbf16> to vector<128x128xbf16>
    %cst_92 = arith.constant dense<0.000000e+00> : vector<8x128xf32>
    %108 = tpu.matmul %105, %107, %cst_92 {dimension_numbers = #tpu.dot_dimension_numbers<[1], [0], [0], [1], [0, 0, 1, 1], [], []>} : vector<8x128xbf16>, vector<128x128xbf16>, vector<8x128xf32> -> vector<8x128xf32>
    %109 = arith.addf %103, %108 : vector<8x128xf32>
    %c7_93 = arith.constant 7 : index
    %c0_94 = arith.constant 0 : index
    %110 = tpu.strided_load %arg7[%c7_93, %c0_94] {strides = array<i32: 36, 1>} : memref<288x128xf32, #tpu.memory_space<vmem>>, vector<8x128xf32>
    %111 = arith.truncf %110 : vector<8x128xf32> to vector<8x128xbf16>
    %c5_95 = arith.constant 5 : index
    %c0_96 = arith.constant 0 : index
    %c0_97 = arith.constant 0 : index
    %112 = vector.load %arg4[%c5_95, %c0_96, %c0_97] : memref<16x128x128xbf16, #tpu.memory_space<vmem>>, vector<1x128x128xbf16>
    %113 = vector.shape_cast %112 : vector<1x128x128xbf16> to vector<128x128xbf16>
    %cst_98 = arith.constant dense<0.000000e+00> : vector<8x128xf32>
    %114 = tpu.matmul %111, %113, %cst_98 {dimension_numbers = #tpu.dot_dimension_numbers<[1], [0], [0], [1], [0, 0, 1, 1], [], []>} : vector<8x128xbf16>, vector<128x128xbf16>, vector<8x128xf32> -> vector<8x128xf32>
    %115 = arith.addf %109, %114 : vector<8x128xf32>
    %c8_99 = arith.constant 8 : index
    %c0_100 = arith.constant 0 : index
    %116 = tpu.strided_load %arg7[%c8_99, %c0_100] {strides = array<i32: 36, 1>} : memref<288x128xf32, #tpu.memory_space<vmem>>, vector<8x128xf32>
    %117 = arith.truncf %116 : vector<8x128xf32> to vector<8x128xbf16>
    %c6_101 = arith.constant 6 : index
    %c0_102 = arith.constant 0 : index
    %c0_103 = arith.constant 0 : index
    %118 = vector.load %arg4[%c6_101, %c0_102, %c0_103] : memref<16x128x128xbf16, #tpu.memory_space<vmem>>, vector<1x128x128xbf16>
    %119 = vector.shape_cast %118 : vector<1x128x128xbf16> to vector<128x128xbf16>
    %cst_104 = arith.constant dense<0.000000e+00> : vector<8x128xf32>
    %120 = tpu.matmul %117, %119, %cst_104 {dimension_numbers = #tpu.dot_dimension_numbers<[1], [0], [0], [1], [0, 0, 1, 1], [], []>} : vector<8x128xbf16>, vector<128x128xbf16>, vector<8x128xf32> -> vector<8x128xf32>
    %121 = arith.addf %115, %120 : vector<8x128xf32>
    %c9 = arith.constant 9 : index
    %c0_105 = arith.constant 0 : index
    %122 = tpu.strided_load %arg7[%c9, %c0_105] {strides = array<i32: 36, 1>} : memref<288x128xf32, #tpu.memory_space<vmem>>, vector<8x128xf32>
    %123 = arith.truncf %122 : vector<8x128xf32> to vector<8x128xbf16>
    %c7_106 = arith.constant 7 : index
    %c0_107 = arith.constant 0 : index
    %c0_108 = arith.constant 0 : index
    %124 = vector.load %arg4[%c7_106, %c0_107, %c0_108] : memref<16x128x128xbf16, #tpu.memory_space<vmem>>, vector<1x128x128xbf16>
    %125 = vector.shape_cast %124 : vector<1x128x128xbf16> to vector<128x128xbf16>
    %cst_109 = arith.constant dense<0.000000e+00> : vector<8x128xf32>
    %126 = tpu.matmul %123, %125, %cst_109 {dimension_numbers = #tpu.dot_dimension_numbers<[1], [0], [0], [1], [0, 0, 1, 1], [], []>} : vector<8x128xbf16>, vector<128x128xbf16>, vector<8x128xf32> -> vector<8x128xf32>
    %127 = arith.addf %121, %126 : vector<8x128xf32>
    %c12_110 = arith.constant 12 : index
    %c0_111 = arith.constant 0 : index
    %128 = tpu.strided_load %arg7[%c12_110, %c0_111] {strides = array<i32: 36, 1>} : memref<288x128xf32, #tpu.memory_space<vmem>>, vector<8x128xf32>
    %129 = arith.truncf %128 : vector<8x128xf32> to vector<8x128xbf16>
    %c8_112 = arith.constant 8 : index
    %c0_113 = arith.constant 0 : index
    %c0_114 = arith.constant 0 : index
    %130 = vector.load %arg4[%c8_112, %c0_113, %c0_114] : memref<16x128x128xbf16, #tpu.memory_space<vmem>>, vector<1x128x128xbf16>
    %131 = vector.shape_cast %130 : vector<1x128x128xbf16> to vector<128x128xbf16>
    %cst_115 = arith.constant dense<0.000000e+00> : vector<8x128xf32>
    %132 = tpu.matmul %129, %131, %cst_115 {dimension_numbers = #tpu.dot_dimension_numbers<[1], [0], [0], [1], [0, 0, 1, 1], [], []>} : vector<8x128xbf16>, vector<128x128xbf16>, vector<8x128xf32> -> vector<8x128xf32>
    %133 = arith.addf %127, %132 : vector<8x128xf32>
    %c13_116 = arith.constant 13 : index
    %c0_117 = arith.constant 0 : index
    %134 = tpu.strided_load %arg7[%c13_116, %c0_117] {strides = array<i32: 36, 1>} : memref<288x128xf32, #tpu.memory_space<vmem>>, vector<8x128xf32>
    %135 = arith.truncf %134 : vector<8x128xf32> to vector<8x128xbf16>
    %c9_118 = arith.constant 9 : index
    %c0_119 = arith.constant 0 : index
    %c0_120 = arith.constant 0 : index
    %136 = vector.load %arg4[%c9_118, %c0_119, %c0_120] : memref<16x128x128xbf16, #tpu.memory_space<vmem>>, vector<1x128x128xbf16>
    %137 = vector.shape_cast %136 : vector<1x128x128xbf16> to vector<128x128xbf16>
    %cst_121 = arith.constant dense<0.000000e+00> : vector<8x128xf32>
    %138 = tpu.matmul %135, %137, %cst_121 {dimension_numbers = #tpu.dot_dimension_numbers<[1], [0], [0], [1], [0, 0, 1, 1], [], []>} : vector<8x128xbf16>, vector<128x128xbf16>, vector<8x128xf32> -> vector<8x128xf32>
    %139 = arith.addf %133, %138 : vector<8x128xf32>
    %c14_122 = arith.constant 14 : index
    %c0_123 = arith.constant 0 : index
    %140 = tpu.strided_load %arg7[%c14_122, %c0_123] {strides = array<i32: 36, 1>} : memref<288x128xf32, #tpu.memory_space<vmem>>, vector<8x128xf32>
    %141 = arith.truncf %140 : vector<8x128xf32> to vector<8x128xbf16>
    %c10 = arith.constant 10 : index
    %c0_124 = arith.constant 0 : index
    %c0_125 = arith.constant 0 : index
    %142 = vector.load %arg4[%c10, %c0_124, %c0_125] : memref<16x128x128xbf16, #tpu.memory_space<vmem>>, vector<1x128x128xbf16>
    %143 = vector.shape_cast %142 : vector<1x128x128xbf16> to vector<128x128xbf16>
    %cst_126 = arith.constant dense<0.000000e+00> : vector<8x128xf32>
    %144 = tpu.matmul %141, %143, %cst_126 {dimension_numbers = #tpu.dot_dimension_numbers<[1], [0], [0], [1], [0, 0, 1, 1], [], []>} : vector<8x128xbf16>, vector<128x128xbf16>, vector<8x128xf32> -> vector<8x128xf32>
    %145 = arith.addf %139, %144 : vector<8x128xf32>
    %c15 = arith.constant 15 : index
    %c0_127 = arith.constant 0 : index
    %146 = tpu.strided_load %arg7[%c15, %c0_127] {strides = array<i32: 36, 1>} : memref<288x128xf32, #tpu.memory_space<vmem>>, vector<8x128xf32>
    %147 = arith.truncf %146 : vector<8x128xf32> to vector<8x128xbf16>
    %c11 = arith.constant 11 : index
    %c0_128 = arith.constant 0 : index
    %c0_129 = arith.constant 0 : index
    %148 = vector.load %arg4[%c11, %c0_128, %c0_129] : memref<16x128x128xbf16, #tpu.memory_space<vmem>>, vector<1x128x128xbf16>
    %149 = vector.shape_cast %148 : vector<1x128x128xbf16> to vector<128x128xbf16>
    %cst_130 = arith.constant dense<0.000000e+00> : vector<8x128xf32>
    %150 = tpu.matmul %147, %149, %cst_130 {dimension_numbers = #tpu.dot_dimension_numbers<[1], [0], [0], [1], [0, 0, 1, 1], [], []>} : vector<8x128xbf16>, vector<128x128xbf16>, vector<8x128xf32> -> vector<8x128xf32>
    %151 = arith.addf %145, %150 : vector<8x128xf32>
    %c18 = arith.constant 18 : index
    %c0_131 = arith.constant 0 : index
    %152 = tpu.strided_load %arg7[%c18, %c0_131] {strides = array<i32: 36, 1>} : memref<288x128xf32, #tpu.memory_space<vmem>>, vector<8x128xf32>
    %153 = arith.truncf %152 : vector<8x128xf32> to vector<8x128xbf16>
    %c12_132 = arith.constant 12 : index
    %c0_133 = arith.constant 0 : index
    %c0_134 = arith.constant 0 : index
    %154 = vector.load %arg4[%c12_132, %c0_133, %c0_134] : memref<16x128x128xbf16, #tpu.memory_space<vmem>>, vector<1x128x128xbf16>
    %155 = vector.shape_cast %154 : vector<1x128x128xbf16> to vector<128x128xbf16>
    %cst_135 = arith.constant dense<0.000000e+00> : vector<8x128xf32>
    %156 = tpu.matmul %153, %155, %cst_135 {dimension_numbers = #tpu.dot_dimension_numbers<[1], [0], [0], [1], [0, 0, 1, 1], [], []>} : vector<8x128xbf16>, vector<128x128xbf16>, vector<8x128xf32> -> vector<8x128xf32>
    %157 = arith.addf %151, %156 : vector<8x128xf32>
    %c19 = arith.constant 19 : index
    %c0_136 = arith.constant 0 : index
    %158 = tpu.strided_load %arg7[%c19, %c0_136] {strides = array<i32: 36, 1>} : memref<288x128xf32, #tpu.memory_space<vmem>>, vector<8x128xf32>
    %159 = arith.truncf %158 : vector<8x128xf32> to vector<8x128xbf16>
    %c13_137 = arith.constant 13 : index
    %c0_138 = arith.constant 0 : index
    %c0_139 = arith.constant 0 : index
    %160 = vector.load %arg4[%c13_137, %c0_138, %c0_139] : memref<16x128x128xbf16, #tpu.memory_space<vmem>>, vector<1x128x128xbf16>
    %161 = vector.shape_cast %160 : vector<1x128x128xbf16> to vector<128x128xbf16>
    %cst_140 = arith.constant dense<0.000000e+00> : vector<8x128xf32>
    %162 = tpu.matmul %159, %161, %cst_140 {dimension_numbers = #tpu.dot_dimension_numbers<[1], [0], [0], [1], [0, 0, 1, 1], [], []>} : vector<8x128xbf16>, vector<128x128xbf16>, vector<8x128xf32> -> vector<8x128xf32>
    %163 = arith.addf %157, %162 : vector<8x128xf32>
    %c20 = arith.constant 20 : index
    %c0_141 = arith.constant 0 : index
    %164 = tpu.strided_load %arg7[%c20, %c0_141] {strides = array<i32: 36, 1>} : memref<288x128xf32, #tpu.memory_space<vmem>>, vector<8x128xf32>
    %165 = arith.truncf %164 : vector<8x128xf32> to vector<8x128xbf16>
    %c14_142 = arith.constant 14 : index
    %c0_143 = arith.constant 0 : index
    %c0_144 = arith.constant 0 : index
    %166 = vector.load %arg4[%c14_142, %c0_143, %c0_144] : memref<16x128x128xbf16, #tpu.memory_space<vmem>>, vector<1x128x128xbf16>
    %167 = vector.shape_cast %166 : vector<1x128x128xbf16> to vector<128x128xbf16>
    %cst_145 = arith.constant dense<0.000000e+00> : vector<8x128xf32>
    %168 = tpu.matmul %165, %167, %cst_145 {dimension_numbers = #tpu.dot_dimension_numbers<[1], [0], [0], [1], [0, 0, 1, 1], [], []>} : vector<8x128xbf16>, vector<128x128xbf16>, vector<8x128xf32> -> vector<8x128xf32>
    %169 = arith.addf %163, %168 : vector<8x128xf32>
    %c21 = arith.constant 21 : index
    %c0_146 = arith.constant 0 : index
    %170 = tpu.strided_load %arg7[%c21, %c0_146] {strides = array<i32: 36, 1>} : memref<288x128xf32, #tpu.memory_space<vmem>>, vector<8x128xf32>
    %171 = arith.truncf %170 : vector<8x128xf32> to vector<8x128xbf16>
    %c15_147 = arith.constant 15 : index
    %c0_148 = arith.constant 0 : index
    %c0_149 = arith.constant 0 : index
    %172 = vector.load %arg4[%c15_147, %c0_148, %c0_149] : memref<16x128x128xbf16, #tpu.memory_space<vmem>>, vector<1x128x128xbf16>
    %173 = vector.shape_cast %172 : vector<1x128x128xbf16> to vector<128x128xbf16>
    %cst_150 = arith.constant dense<0.000000e+00> : vector<8x128xf32>
    %174 = tpu.matmul %171, %173, %cst_150 {dimension_numbers = #tpu.dot_dimension_numbers<[1], [0], [0], [1], [0, 0, 1, 1], [], []>} : vector<8x128xbf16>, vector<128x128xbf16>, vector<8x128xf32> -> vector<8x128xf32>
    %175 = arith.addf %169, %174 : vector<8x128xf32>
    %c0_151 = arith.constant 0 : index
    %c0_152 = arith.constant 0 : index
    %176 = vector.load %arg5[%c0_151, %c0_152] : memref<8x128xf32, #tpu.memory_space<vmem>>, vector<8x128xf32>
    tpu.vector_store %arg5[%c0_151, %c0_152], %175 {strides = array<i32>} : memref<8x128xf32, #tpu.memory_space<vmem>>, vector<8x128xf32>,
    return
  }
  func.func @transform_0(%arg0: i32) -> (i32, i32) {
    %c0_i32 = arith.constant 0 : i32
    %c0_i32_0 = arith.constant 0 : i32
    %c0_i32_1 = arith.constant 0 : i32
    return %c0_i32, %c0_i32_0 : i32, i32
  }
  func.func @transform_1(%arg0: i32) -> (i32, i32) {
    %c0_i32 = arith.constant 0 : i32
    %c0_i32_0 = arith.constant 0 : i32
    %c0_i32_1 = arith.constant 0 : i32
    return %c0_i32, %c0_i32_0 : i32, i32
  }
  func.func @transform_2(%arg0: i32) -> (i32, i32, i32) {
    %c0_i32 = arith.constant 0 : i32
    %c0_i32_0 = arith.constant 0 : i32
    %c0_i32_1 = arith.constant 0 : i32
    %c0_i32_2 = arith.constant 0 : i32
    return %c0_i32, %c0_i32_0, %c0_i32_1 : i32, i32, i32
  }
  func.func @transform_3(%arg0: i32) -> (i32, i32, i32) {
    %c0_i32 = arith.constant 0 : i32
    %c0_i32_0 = arith.constant 0 : i32
    %c0_i32_1 = arith.constant 0 : i32
    %c0_i32_2 = arith.constant 0 : i32
    return %c0_i32, %c0_i32_0, %c0_i32_1 : i32, i32, i32
  }
  func.func @transform_4(%arg0: i32) -> (i32, i32) {
    %c0_i32 = arith.constant 0 : i32
    %c0_i32_0 = arith.constant 0 : i32
    %c0_i32_1 = arith.constant 0 : i32
    return %c0_i32, %c0_i32_0 : i32, i32
  }
}

</mosaic_0001>

<bundles_post_ra>
// kernel: example_net_forward.2
= control target key start
LH: loop header
LB: loop body
LE: loop exit
PB: predicated region body
PF: predicated region fallthrough
CT: control target
= control target key end

     0   :  { %s870_s9 = smov 0   ;;  %s967_s0 = inlined_call_operand.vmem [shape: bf16[1792,128], index: 0, kind: input, shape index: {}]   ;;  %s968_s1 = inlined_call_operand.vmem [shape: bf16[128,128], index: 1, kind: input, shape index: {}]   ;;  %s969_s2 = inlined_call_operand.vmem [shape: bf16[448,128], index: 2, kind: output, shape index: {}]  }
   0x1 LB: > { %s653_s10 = sadd.s32 4294967295, %s853_s9   ;;  %p657_p0 = scmp.ge.s32.totalorder %s853_s9, 1  ;;  %s853_s9 = sphi %s870_s9, %s12_s9  }
   0x2   : > { %p113_p1 = scmp.lt.s32.totalorder %s853_s9, 8 }
   0x4   : > { %p114_p2 = pnand %p657_p0, %p113_p1 }
   0x5   : > { %v823_v0 = vld [vmem:[%s968_s1] sm:$0xff] (!%p114_p2)   ;;  %s658_s13 = sshll.u32 (!%p114_p2), %s653_s10, 5  ;;  %v824_v1 = vld [vmem:[%s968_s1 + $0x8] sm:$0xff] (!%p114_p2)   ;;  %v825_v2 = vld [vmem:[%s968_s1 + $0x10] sm:$0xff] (!%p114_p2)   ;;  %s660_s4 = sshll.u32 (!%p114_p2), %s653_s10, 3 }
   0x6   : > { %117 = sbr.rel (%p114_p2) target bundleno = 288 (0x120), region = 28  ;;  %p136_p3 = scmp.lt.s32.totalorder (!%p114_p2), %s658_s13, 223  ;;  %751 = vmatprep.subr.bf16.mxu0 (!%p114_p2), %v823_v0  ;;  %799 = vmatprep.subr.bf16.mxu1 (!%p114_p2), %v823_v0  ;;  %v826_v3 = vld [vmem:[%s968_s1 + $0x18] sm:$0xff] (!%p114_p2)   ;;  %v827_v6 = vld [vmem:[%s968_s1 + $0x20] sm:$0xff] (!%p114_p2)   ;;  %v828_v7 = vld [vmem:[%s968_s1 + $0x28] sm:$0xff] (!%p114_p2)  }
   0x7   : > { %752 = vmatpush3.bf16.msra.mxu0 (!%p114_p2), %v823_v0  ;;  %807 = vmatpush3.bf16.msra.mxu1 (!%p114_p2), %v823_v0  ;;  %v829_v8 = vld [vmem:[%s968_s1 + $0x30] sm:$0xff] (!%p114_p2)   ;;  %v830_v9 = vld [vmem:[%s968_s1 + $0x38] sm:$0xff] (!%p114_p2)   ;;  %p142_p4 = scmp.lt.s32.totalorder (!%p114_p2), %s660_s4, 55 }
   0x8   : > { %753 = vmatprep.subr.bf16.mxu0 (!%p114_p2), %v824_v1  ;;  %800 = vmatprep.subr.bf16.mxu1 (!%p114_p2), %v824_v1 }
   0xb   : > { %754 = vmatpush3.bf16.msra.mxu0 (!%p114_p2), %v824_v1  ;;  %808 = vmatpush3.bf16.msra.mxu1 (!%p114_p2), %v824_v1 }
   0xc   : > { %755 = vmatprep.subr.bf16.mxu0 (!%p114_p2), %v825_v2  ;;  %801 = vmatprep.subr.bf16.mxu1 (!%p114_p2), %v825_v2 }
   0xd   : > { %s971_s13 = smov (!%p136_p3, %s658_s13), 223  ;;  %s973_s4 = smov (!%p142_p4, %s660_s4), 55 }
   0xe   : > { %s659_s18 = sshll.u32 %s971_s13, 2  ;;  %s661_s5 = sshll.u32 %s973_s4, 2 }
   0xf   : > { %s892_s21 = scalar_lea.vmem %s967_s0, %s659_s18  ;;  %756 = vmatpush3.bf16.msra.mxu0 %v825_v2  ;;  %809 = vmatpush3.bf16.msra.mxu1 %v825_v2  ;;  %s956_s8 = scalar_lea.vmem %s969_s2, %s661_s5 }
  0x10   : > { %v831_v4 = vld [vmem:[%s892_s21] sm:$0xff]   ;;  %757 = vmatprep.subr.bf16.mxu0 %v826_v3  ;;  %802 = vmatprep.subr.bf16.mxu1 %v826_v3  ;;  %v832_v10 = vld [vmem:[%s892_s21 + $0x8] sm:$0xff]   ;;  %v835_v12 = vld [vmem:[%s892_s21 + $0x10] sm:$0xff]  }
  0x11   : > { %767 = vmatprep.mubr.bf16.mxu0 %v831_v4  ;;  %v833_v5 = vld [vmem:[%s892_s21 + $0x40] sm:$0xff]   ;;  %v834_v11 = vld [vmem:[%s892_s21 + $0x48] sm:$0xff]   ;;  %v837_v13 = vld [vmem:[%s892_s21 + $0x50] sm:$0xff]  }
  0x12   : > { %783 = vmatprep.mubr.bf16.mxu1 %v833_v5  ;;  %v836_v14 = vld [vmem:[%s892_s21 + $0x18] sm:$0xff]   ;;  %v839_v16 = vld [vmem:[%s892_s21 + $0x20] sm:$0xff]   ;;  %v840_v18 = vld [vmem:[%s892_s21 + $0x28] sm:$0xff]  }
  0x13   : > { %758 = vmatpush3.bf16.msra.mxu0 %v826_v3  ;;  %810 = vmatpush3.bf16.msra.mxu1 %v826_v3  ;;  %v838_v15 = vld [vmem:[%s892_s21 + $0x58] sm:$0xff]   ;;  %v841_v17 = vld [vmem:[%s892_s21 + $0x60] sm:$0xff]   ;;  %v842_v19 = vld [vmem:[%s892_s21 + $0x68] sm:$0xff]  }
  0x14   : > { %759 = vmatprep.subr.bf16.mxu0 %v827_v6  ;;  %803 = vmatprep.subr.bf16.mxu1 %v827_v6  ;;  %v843_v20 = vld [vmem:[%s892_s21 + $0x30] sm:$0xff]   ;;  %v844_v22 = vld [vmem:[%s892_s21 + $0x38] sm:$0xff]  }
  0x15   : > { %v845_v21 = vld [vmem:[%s892_s21 + $0x70] sm:$0xff]   ;;  %v846_v23 = vld [vmem:[%s892_s21 + $0x78] sm:$0xff]  }
  0x17   : > { %760 = vmatpush3.bf16.msra.mxu0 %v827_v6  ;;  %811 = vmatpush3.bf16.msra.mxu1 %v827_v6 }
  0x18   : > { %761 = vmatprep.subr.bf16.mxu0 %v828_v7  ;;  %804 = vmatprep.subr.bf16.mxu1 %v828_v7 }
  0x1b   : > { %762 = vmatpush3.bf16.msra.mxu0 %v828_v7  ;;  %812 = vmatpush3.bf16.msra.mxu1 %v828_v7 }
  0x1c   : > { %763 = vmatprep.subr.bf16.mxu0 %v829_v8  ;;  %805 = vmatprep.subr.bf16.mxu1 %v829_v8 }
  0x1f   : > { %764 = vmatpush3.bf16.msra.mxu0 %v829_v8  ;;  %813 = vmatpush3.bf16.msra.mxu1 %v829_v8 }
  0x20   : > { %765 = vmatprep.subr.bf16.mxu0 %v830_v9  ;;  %806 = vmatprep.subr.bf16.mxu1 %v830_v9 }
  0x23   : > { %766 = vmatpush3.bf16.msra.mxu0 %v830_v9  ;;  %814 = vmatpush3.bf16.msra.mxu1 %v830_v9 }
  0x26   : > { %768 = vmatmul.mubr.bf16.vlgmr.msra.gmra.mrb[0].mxu0 %v832_v10  ;;  %784 = vmatmul.mubr.bf16.vlgmr.msra.gmra.mrb[0].mxu1 %v834_v11 }
  0x27   : > { %771 = vmatprep.mubr.bf16.mxu0 %v835_v12  ;;  %787 = vmatprep.mubr.bf16.mxu1 %v837_v13 }
  0x2e   : > { %772 = vmatmul.mubr.bf16.gmra.mrb[4].mxu0 %v836_v14  ;;  %788 = vmatmul.mubr.bf16.gmra.mrb[4].mxu1 %v838_v15 }
  0x2f   : > { %775 = vmatprep.mubr.bf16.mxu0 %v839_v16  ;;  %791 = vmatprep.mubr.bf16.mxu1 %v841_v17 }
  0x36   : > { %776 = vmatmul.mubr.bf16.gmra.mrb[8].mxu0 %v840_v18  ;;  %792 = vmatmul.mubr.bf16.gmra.mrb[8].mxu1 %v842_v19 }
  0x37   : > { %779 = vmatprep.mubr.bf16.mxu0 %v843_v20  ;;  %795 = vmatprep.mubr.bf16.mxu1 %v845_v21 }
  0x3e   : > { %780 = vmatmul.mubr.bf16.gmra.mrb[12].mxu0 %v844_v22  ;;  %796 = vmatmul.mubr.bf16.gmra.mrb[12].mxu1 %v846_v23 }
  0xf9   : > { %v769_v24 = vpop.f32.mrb[0].mxu0  ;;  %v785_v25 = vpop.f32.mrb[0].mxu1 }
  0xfa   : > { %v374_v26 = vpop.f32.mrb[1].mxu0  ;;  %v438_v27 = vpop.f32.mrb[1].mxu1  ;;  %v503_v42 = vmax.f32 %v769_v24, 0.0  ;;  %v519_v47 = vmax.f32 %v785_v25, 0.0 }
  0xfb   : > { %v770_v28 = vpop.f32.mrb[2].mxu0  ;;  %v786_v29 = vpop.f32.mrb[2].mxu1  ;;  %v501_v46 = vmax.f32 %v374_v26, 0.0  ;;  %v517_v48 = vmax.f32 %v438_v27, 0.0 }
  0xfc   : > { %v377_v30 = vpop.f32.mrb[3].mxu0  ;;  %v441_v31 = vpop.f32.mrb[3].mxu1  ;;  %v504_v52 = vmax.f32 %v770_v28, 0.0  ;;  %v520_v62 = vmax.f32 %v786_v29, 0.0 }
  0xfd   : > { %v502_v58 = vmax.f32 %v377_v30, 0.0  ;;  %v518_v1 = vmax.f32 %v441_v31, 0.0 }
 0x101   : > { %v925_v32 = vpop.f32.mrb[4].mxu0  ;;  %v927_v33 = vpop.f32.mrb[4].mxu1 }
 0x102   : > { %v929_v34 = vpop.f32.mrb[5].mxu0  ;;  %v931_v35 = vpop.f32.mrb[5].mxu1  ;;  %v507_v4 = vmax.f32 %v925_v32, 0.0  ;;  %v523_v8 = vmax.f32 %v927_v33, 0.0 }
 0x103   : > { %v933_v36 = vpop.f32.mrb[6].mxu0  ;;  %v935_v37 = vpop.f32.mrb[6].mxu1  ;;  %v505_v14 = vmax.f32 %v929_v34, 0.0  ;;  %v521_v15 = vmax.f32 %v931_v35, 0.0 }
 0x104   : > { %v937_v38 = vpop.f32.mrb[7].mxu0  ;;  %v939_v39 = vpop.f32.mrb[7].mxu1  ;;  %v508_v20 = vmax.f32 %v933_v36, 0.0  ;;  %v524_v36 = vmax.f32 %v935_v37, 0.0 }
 0x105   : > { %v506_v21 = vmax.f32 %v937_v38, 0.0 }
 0x109   : > { %v777_v40 = vpop.f32.mrb[8].mxu0  ;;  %v793_v41 = vpop.f32.mrb[8].mxu1 }
 0x10a   : > { %v511_v43 = vmax.f32 %v777_v40, 0.0  ;;  %v406_v44 = vpop.f32.mrb[9].mxu0  ;;  %v470_v45 = vpop.f32.mrb[9].mxu1  ;;  %v527_v54 = vmax.f32 %v793_v41, 0.0  ;;  %v522_v41 = vmax.f32 %v939_v39, 0.0 }
 0x10b   : > { %v509_v49 = vmax.f32 %v406_v44, 0.0  ;;  %v778_v50 = vpop.f32.mrb[10].mxu0  ;;  %v794_v51 = vpop.f32.mrb[10].mxu1  ;;  %v525_v60 = vmax.f32 %v470_v45, 0.0 }
 0x10c   : > { %v535_v53 = vadd.f32 %v511_v43, %v503_v42  ;;  %v512_v55 = vmax.f32 %v778_v50, 0.0  ;;  %v409_v56 = vpop.f32.mrb[11].mxu0  ;;  %v473_v57 = vpop.f32.mrb[11].mxu1  ;;  %v528_v6 = vmax.f32 %v794_v51, 0.0 }
 0x10d   : > { %v533_v59 = vadd.f32 %v509_v49, %v501_v46  ;;  %v510_v61 = vmax.f32 %v409_v56, 0.0  ;;  %v526_v10 = vmax.f32 %v473_v57, 0.0 }
 0x10e   : > { %v543_v63 = vadd.f32 %v535_v53, %v519_v47  ;;  %v536_v0 = vadd.f32 %v512_v55, %v504_v52 }
 0x10f   : > { %v541_v2 = vadd.f32 %v533_v59, %v517_v48  ;;  %v534_v3 = vadd.f32 %v510_v61, %v502_v58 }
 0x110   : > { %v551_v5 = vadd.f32 %v543_v63, %v527_v54  ;;  %v544_v7 = vadd.f32 %v536_v0, %v520_v62 }
 0x111   : > { %v549_v9 = vadd.f32 %v541_v2, %v525_v60  ;;  %v542_v11 = vadd.f32 %v534_v3, %v518_v1  ;;  %v781_v12 = vpop.f32.mrb[12].mxu0  ;;  %v797_v13 = vpop.f32.mrb[12].mxu1 }
 0x112   : > { %v552_v16 = vadd.f32 %v544_v7, %v528_v6  ;;  %v515_v17 = vmax.f32 %v781_v12, 0.0  ;;  %v422_v18 = vpop.f32.mrb[13].mxu0  ;;  %v486_v19 = vpop.f32.mrb[13].mxu1  ;;  %v531_v28 = vmax.f32 %v797_v13, 0.0 }
 0x113   : > { %v550_v22 = vadd.f32 %v542_v11, %v526_v10  ;;  %v513_v23 = vmax.f32 %v422_v18, 0.0  ;;  %v782_v24 = vpop.f32.mrb[14].mxu0  ;;  %v798_v25 = vpop.f32.mrb[14].mxu1  ;;  %v529_v34 = vmax.f32 %v486_v19, 0.0 }
 0x114   : > { %v712_v26 = vpack.c.bf16 %v552_v16, %v551_v5  ;;  %v539_v27 = vadd.f32 %v515_v17, %v507_v4  ;;  %v516_v29 = vmax.f32 %v782_v24, 0.0  ;;  %v425_v30 = vpop.f32.mrb[15].mxu0  ;;  %v489_v31 = vpop.f32.mrb[15].mxu1  ;;  %v532_v45 = vmax.f32 %v798_v25, 0.0 }
 0x115   : > { %v707_v32 = vpack.c.bf16 %v550_v22, %v549_v9  ;;  %v537_v33 = vadd.f32 %v513_v23, %v505_v14  ;;  %v514_v35 = vmax.f32 %v425_v30, 0.0  ;;  %v530_v48 = vmax.f32 %v489_v31, 0.0 }
 0x116   : > { %724 = vst [vmem:[%s956_s8 + $0x8] sm:$0xff] %v712_v26   ;;  %v547_v38 = vadd.f32 %v539_v27, %v523_v8  ;;  %v540_v40 = vadd.f32 %v516_v29, %v508_v20 }
 0x117   : > { %708 = vst [vmem:[%s956_s8] sm:$0xff] %v707_v32   ;;  %v545_v42 = vadd.f32 %v537_v33, %v521_v15  ;;  %v538_v43 = vadd.f32 %v514_v35, %v506_v21 }
 0x118   : > { %v555_v44 = vadd.f32 %v547_v38, %v531_v28  ;;  %v548_v46 = vadd.f32 %v540_v40, %v524_v36 }
 0x119   : > { %v553_v47 = vadd.f32 %v545_v42, %v529_v34  ;;  %v546_v49 = vadd.f32 %v538_v43, %v522_v41 }
 0x11a   : > { %v556_v50 = vadd.f32 %v548_v46, %v532_v45 }
 0x11b   : > { %v554_v51 = vadd.f32 %v546_v49, %v530_v48 }
 0x11c   : > { %v722_v52 = vpack.c.bf16 %v556_v50, %v555_v44 }
 0x11d   : > { %v717_v37 = vpack.c.bf16 %v554_v51, %v553_v47 }
 0x11e   : > { %726 = vst [vmem:[%s956_s8 + $0x18] sm:$0xff] %v722_v52  }
 0x11f   : > { %725 = vst [vmem:[%s956_s8 + $0x10] sm:$0xff] %v717_v37  }
 0x120 PF: > { %s12_s9 = sadd.s32 1, %s853_s9  }
 0x121   : > { %p9_p5 = scmp.ge.s32.totalorder %s12_s9, 9  }
 0x123   :  { %11 = sbr.rel (!%p9_p5) target bundleno = 1 (0x1), region = 58 }

// kernel: example_net_forward.3
= control target key start
LH: loop header
LB: loop body
LE: loop exit
PB: predicated region body
PF: predicated region fallthrough
CT: control target
= control target key end

     0   :  { %v5827_v0 = vmov 0.0   ;;  %vm5828_vm0 = vmmov 0   ;;  %s7057_s1 = inlined_call_operand.vmem [shape: bf16[128,128], index: 1, kind: input, shape index: {}]   ;;  %s7058_s0 = inlined_call_operand.vmem [shape: bf16[288,128], index: 0, kind: input, shape index: {}]   ;;  %s7059_s2 = inlined_call_operand.vmem [shape: bf16[9,128,128], index: 2, kind: input, shape index: {}]   ;;  %s7060_s3 = inlined_call_operand.vmem [shape: bf16[16,128,128], index: 3, kind: input, shape index: {}]   ;;  %s7061_s4 = inlined_call_operand.vmem [shape: f32[8,128], index: 4, kind: output, shape index: {}]  }
   0x1   :  { %4628 = vmatprep.subr.bf16.mxu0 %v5827_v0  ;;  %508 = vst [vmem:[#allocation2 + $0x48] sm:$0xff] %v5827_v0  ;;  %509 = vst [vmem:[#allocation2 + $0x50] sm:$0xff] %v5827_v0  ;;  %v5598_v1 = vld [vmem:[%s7057_s1] sm:$0xff]   ;;  %4644 = vmatprep.mubr.msk.bf16.mxu0 %vm5828_vm0, %v5827_v0  ;;  %v5599_v2 = vld [vmem:[%s7057_s1 + $0x8] sm:$0xff]  }
   0x2   :  { %1949 = vst [vmem:[#allocation3 + $0x48] sm:$0xff] %v5827_v0  ;;  %1950 = vst [vmem:[#allocation3 + $0x50] sm:$0xff] %v5827_v0  ;;  %5056 = vmatprep.subr.bf16.mxu1 %v5827_v0  ;;  %5072 = vmatprep.mubr.msk.bf16.mxu1 %vm5828_vm0, %v5827_v0  ;;  %v5600_v3 = vld [vmem:[%s7057_s1 + $0x10] sm:$0xff]   ;;  %v5601_v4 = vld [vmem:[%s7057_s1 + $0x18] sm:$0xff]  }
   0x3   :  { %1951 = vst [vmem:[#allocation3 + $0x58] sm:$0xff] %v5827_v0  ;;  %1953 = vst [vmem:[#allocation3 + $0x68] sm:$0xff] %v5827_v0  ;;  %4629 = vmatpush3.bf16.msra.mxu0 %v5598_v1  ;;  %v5602_v5 = vld [vmem:[%s7057_s1 + $0x20] sm:$0xff]   ;;  %v5603_v6 = vld [vmem:[%s7057_s1 + $0x28] sm:$0xff]  }
   0x4   :  { %1954 = vst [vmem:[#allocation3 + $0x70] sm:$0xff] %v5827_v0  ;;  %1955 = vst [vmem:[#allocation3 + $0x78] sm:$0xff] %v5827_v0  ;;  %4630 = vmatprep.subr.bf16.mxu0 %v5827_v0  ;;  %v5604_v7 = vld [vmem:[%s7057_s1 + $0x30] sm:$0xff]   ;;  %v5605_v8 = vld [vmem:[%s7057_s1 + $0x38] sm:$0xff]  }
   0x5   :  { %1956 = vst [vmem:[#allocation3 + $0x80] sm:$0xff] %v5827_v0  ;;  %1958 = vst [vmem:[#allocation3 + $0x90] sm:$0xff] %v5827_v0  ;;  %v5606_v9 = vld [vmem:[%s7058_s0] sm:$0xff]   ;;  %v5607_v10 = vld [vmem:[%s7058_s0 + $0x8] sm:$0xff]  }
   0x6   :  { %1959 = vst [vmem:[#allocation3 + $0x98] sm:$0xff] %v5827_v0  ;;  %1960 = vst [vmem:[#allocation3 + $0xa0] sm:$0xff] %v5827_v0  ;;  %v5608_v11 = vld [vmem:[%s7058_s0 + $0x10] sm:$0xff]   ;;  %v5609_v12 = vld [vmem:[%s7058_s0 + $0x18] sm:$0xff]  }
   0x7   :  { %1962 = vst [vmem:[#allocation3 + $0xb0] sm:$0xff] %v5827_v0  ;;  %1963 = vst [vmem:[#allocation3 + $0xb8] sm:$0xff] %v5827_v0  ;;  %4631 = vmatpush3.bf16.msra.mxu0 %v5599_v2  ;;  %v5610_v13 = vld [vmem:[%s7058_s0 + $0x20] sm:$0xff]   ;;  %v5611_v14 = vld [vmem:[%s7058_s0 + $0x28] sm:$0xff]  }
   0x8   :  { %1964 = vst [vmem:[#allocation3 + $0xc0] sm:$0xff] %v5827_v0  ;;  %1965 = vst [vmem:[#allocation3 + $0xc8] sm:$0xff] %v5827_v0  ;;  %4632 = vmatprep.subr.bf16.mxu0 %v5827_v0  ;;  %v5612_v15 = vld [vmem:[%s7058_s0 + $0x30] sm:$0xff]   ;;  %v5613_v16 = vld [vmem:[%s7058_s0 + $0x38] sm:$0xff]  }
   0x9   :  { %1967 = vst [vmem:[#allocation3 + $0xd8] sm:$0xff] %v5827_v0  ;;  %1968 = vst [vmem:[#allocation3 + $0xe0] sm:$0xff] %v5827_v0  ;;  %v5614_v17 = vld [vmem:[%s7058_s0 + $0x40] sm:$0xff]   ;;  %v5615_v18 = vld [vmem:[%s7058_s0 + $0x48] sm:$0xff]  }
   0xa   :  { %1969 = vst [vmem:[#allocation3 + $0xe8] sm:$0xff] %v5827_v0  ;;  %1971 = vst [vmem:[#allocation3 + $0xf8] sm:$0xff] %v5827_v0  ;;  %v5616_v19 = vld [vmem:[%s7058_s0 + $0x50] sm:$0xff]   ;;  %v5617_v20 = vld [vmem:[%s7058_s0 + $0x58] sm:$0xff]  }
   0xb   :  { %1972 = vst [vmem:[#allocation3 + $0x100] sm:$0xff] %v5827_v0  ;;  %1973 = vst [vmem:[#allocation3 + $0x108] sm:$0xff] %v5827_v0  ;;  %4633 = vmatpush3.bf16.msra.mxu0 %v5600_v3  ;;  %v5618_v21 = vld [vmem:[%s7058_s0 + $0x60] sm:$0xff]   ;;  %v5619_v22 = vld [vmem:[%s7058_s0 + $0x68] sm:$0xff]  }
   0xc   :  { %1974 = vst [vmem:[#allocation3 + $0x110] sm:$0xff] %v5827_v0  ;;  %4634 = vmatprep.subr.bf16.mxu0 %v5827_v0  ;;  %v5620_v23 = vld [vmem:[%s7058_s0 + $0x70] sm:$0xff]   ;;  %v5621_v24 = vld [vmem:[%s7058_s0 + $0x78] sm:$0xff]   ;;  %v5622_v25 = vld [vmem:[%s7058_s0 + $0x80] sm:$0xff]  }
   0xd   :  { %v5623_v26 = vld [vmem:[%s7058_s0 + $0x88] sm:$0xff]   ;;  %v5624_v27 = vld [vmem:[%s7059_s2 + $0x40] sm:$0xff]   ;;  %v5626_v29 = vld [vmem:[%s7059_s2 + $0x50] sm:$0xff]  }
   0xe   :  { %v5625_v28 = vld [vmem:[%s7059_s2 + $0x48] sm:$0xff]   ;;  %v5627_v30 = vld [vmem:[%s7059_s2 + $0x58] sm:$0xff]   ;;  %v5628_v31 = vld [vmem:[%s7059_s2 + $0x60] sm:$0xff]  }
   0xf   :  { %4635 = vmatpush3.bf16.msra.mxu0 %v5601_v4  ;;  %v5629_v32 = vld [vmem:[%s7059_s2 + $0x68] sm:$0xff]   ;;  %v5630_v33 = vld [vmem:[%s7059_s2 + $0x70] sm:$0xff]   ;;  %v5631_v34 = vld [vmem:[%s7059_s2 + $0x78] sm:$0xff]  }
  0x10   :  { %4636 = vmatprep.subr.bf16.mxu0 %v5827_v0 }
  0x13   :  { %4637 = vmatpush3.bf16.msra.mxu0 %v5602_v5 }
  0x14   :  { %4638 = vmatprep.subr.bf16.mxu0 %v5827_v0 }
  0x17   :  { %4639 = vmatpush3.bf16.msra.mxu0 %v5603_v6 }
  0x18   :  { %4640 = vmatprep.subr.bf16.mxu0 %v5827_v0 }
  0x1b   :  { %4641 = vmatpush3.bf16.msra.mxu0 %v5604_v7 }
  0x1c   :  { %4642 = vmatprep.subr.bf16.mxu0 %v5827_v0 }
  0x1f   :  { %4643 = vmatpush3.bf16.msra.mxu0 %v5605_v8 }
  0x20   :  { %4680 = vmatprep.subr.bf16.mxu0 %v5827_v0 }
  0x22   :  { %4645 = vmatmul.mubr.bf16.vlgmr.msra.gmra.mrb[0].mxu0 %v5606_v9 }
  0x23   :  { %4681 = vmatpush3.bf16.msra.mxu0 %v5598_v1  ;;  %4648 = vmatprep.mubr.msk.bf16.mxu0 %vm5828_vm0, %v5827_v0 }
  0x24   :  { %4682 = vmatprep.subr.bf16.mxu0 %v5827_v0 }
  0x27   :  { %4683 = vmatpush3.bf16.msra.mxu0 %v5599_v2 }
  0x28   :  { %4684 = vmatprep.subr.bf16.mxu0 %v5827_v0 }
  0x2a   :  { %4649 = vmatmul.mubr.bf16.gmra.mrb[4].mxu0 %v5607_v10 }
  0x2b   :  { %4652 = vmatprep.mubr.msk.bf16.mxu0 %vm5828_vm0, %v5827_v0  ;;  %4685 = vmatpush3.bf16.msra.mxu0 %v5600_v3 }
  0x2c   :  { %4686 = vmatprep.subr.bf16.mxu0 %v5827_v0 }
  0x2f   :  { %4687 = vmatpush3.bf16.msra.mxu0 %v5601_v4 }
  0x30   :  { %4688 = vmatprep.subr.bf16.mxu0 %v5827_v0 }
  0x32   :  { %4653 = vmatmul.mubr.bf16.gmra.mrb[8].mxu0 %v5608_v11 }
  0x33   :  { %4656 = vmatprep.mubr.msk.bf16.mxu0 %vm5828_vm0, %v5827_v0  ;;  %4689 = vmatpush3.bf16.msra.mxu0 %v5602_v5 }
  0x34   :  { %4690 = vmatprep.subr.bf16.mxu0 %v5827_v0 }
  0x37   :  { %4691 = vmatpush3.bf16.msra.mxu0 %v5603_v6 }
  0x38   :  { %4692 = vmatprep.subr.bf16.mxu0 %v5827_v0 }
  0x3a   :  { %4657 = vmatmul.mubr.bf16.gmra.mrb[12].mxu0 %v5609_v12 }
  0x3b   :  { %4660 = vmatprep.mubr.msk.bf16.mxu0 %vm5828_vm0, %v5827_v0  ;;  %4693 = vmatpush3.bf16.msra.mxu0 %v5604_v7 }
  0x3c   :  { %4694 = vmatprep.subr.bf16.mxu0 %v5827_v0 }
  0x3f   :  { %4695 = vmatpush3.bf16.msra.mxu0 %v5605_v8 }
  0x40   :  { %4732 = vmatprep.subr.bf16.mxu0 %v5827_v0 }
  0x42   :  { %4661 = vmatmul.mubr.bf16.gmra.mrb[16].mxu0 %v5610_v13 }
  0x43   :  { %4664 = vmatprep.mubr.msk.bf16.mxu0 %vm5828_vm0, %v5827_v0 }
  0x4a   :  { %4665 = vmatmul.mubr.bf16.gmra.mrb[20].mxu0 %v5611_v14 }
  0x4b   :  { %4668 = vmatprep.mubr.msk.bf16.mxu0 %vm5828_vm0, %v5827_v0 }
  0x52   :  { %4669 = vmatmul.mubr.bf16.gmra.mrb[24].mxu0 %v5612_v15 }
  0x53   :  { %4672 = vmatprep.mubr.msk.bf16.mxu0 %vm5828_vm0, %v5827_v0 }
  0x5a   :  { %4673 = vmatmul.mubr.bf16.gmra.mrb[28].mxu0 %v5613_v16 }
  0x5b   :  { %4676 = vmatprep.mubr.msk.bf16.mxu0 %vm5828_vm0, %v5827_v0 }
  0x62   :  { %4677 = vmatmul.mubr.bf16.gmra.mrb[32].mxu0 %v5614_v17 }
  0x63   :  { %4696 = vmatprep.mubr.msk.bf16.mxu0 %vm5828_vm0, %v5827_v0 }
  0x6a   :  { %4697 = vmatmul.mubr.bf16.vlgmr.msra.gmra.mrb[36].mxu0 %v5615_v18 }
  0x6b   :  { %4700 = vmatprep.mubr.msk.bf16.mxu0 %vm5828_vm0, %v5827_v0  ;;  %4733 = vmatpush3.bf16.msra.mxu0 %v5624_v27 }
  0x6c   :  { %4734 = vmatprep.subr.bf16.mxu0 %v5827_v0 }
  0x6f   :  { %4735 = vmatpush3.bf16.msra.mxu0 %v5625_v28 }
  0x70   :  { %4736 = vmatprep.subr.bf16.mxu0 %v5827_v0 }
  0x72   :  { %4701 = vmatmul.mubr.bf16.gmra.mrb[40].mxu0 %v5616_v19 }
  0x73   :  { %4704 = vmatprep.mubr.msk.bf16.mxu0 %vm5828_vm0, %v5827_v0  ;;  %4737 = vmatpush3.bf16.msra.mxu0 %v5626_v29 }
  0x74   :  { %4738 = vmatprep.subr.bf16.mxu0 %v5827_v0 }
  0x77   :  { %4739 = vmatpush3.bf16.msra.mxu0 %v5627_v30 }
  0x78   :  { %4740 = vmatprep.subr.bf16.mxu0 %v5827_v0 }
  0x7a   :  { %4705 = vmatmul.mubr.bf16.gmra.mrb[44].mxu0 %v5617_v20 }
  0x7b   :  { %4708 = vmatprep.mubr.msk.bf16.mxu0 %vm5828_vm0, %v5827_v0  ;;  %4741 = vmatpush3.bf16.msra.mxu0 %v5628_v31 }
  0x7c   :  { %4742 = vmatprep.subr.bf16.mxu0 %v5827_v0 }
  0x7f   :  { %4743 = vmatpush3.bf16.msra.mxu0 %v5629_v32 }
  0x80   :  { %4744 = vmatprep.subr.bf16.mxu0 %v5827_v0 }
  0x82   :  { %4709 = vmatmul.mubr.bf16.gmra.mrb[48].mxu0 %v5618_v21 }
  0x83   :  { %4712 = vmatprep.mubr.msk.bf16.mxu0 %vm5828_vm0, %v5827_v0  ;;  %4745 = vmatpush3.bf16.msra.mxu0 %v5630_v33 }
  0x84   :  { %4746 = vmatprep.subr.bf16.mxu0 %v5827_v0 }
  0x87   :  { %4747 = vmatpush3.bf16.msra.mxu0 %v5631_v34 }
  0x88   :  { %4768 = vmatprep.subr.bf16.mxu0 %v5827_v0 }
  0x8a   :  { %4713 = vmatmul.mubr.bf16.gmra.mrb[52].mxu0 %v5619_v22 }
  0x8b   :  { %4716 = vmatprep.mubr.msk.bf16.mxu0 %vm5828_vm0, %v5827_v0 }
  0x92   :  { %4717 = vmatmul.mubr.bf16.gmra.mrb[56].mxu0 %v5620_v23 }
  0x93   :  { %4720 = vmatprep.mubr.msk.bf16.mxu0 %vm5828_vm0, %v5827_v0 }
  0x9a   :  { %4721 = vmatmul.mubr.bf16.gmra.mrb[60].mxu0 %v5621_v24 }
  0x9b   :  { %4724 = vmatprep.mubr.msk.bf16.mxu0 %vm5828_vm0, %v5827_v0 }
  0xa2   :  { %4725 = vmatmul.mubr.bf16.gmra.mrb[64].mxu0 %v5622_v25 }
  0xa3   :  { %4728 = vmatprep.mubr.msk.bf16.mxu0 %vm5828_vm0, %v5827_v0 }
  0xaa   :  { %4729 = vmatmul.mubr.bf16.gmra.mrb[68].mxu0 %v5623_v26 }
  0xab   :  { %4748 = vmatprep.mubr.msk.bf16.mxu0 %vm5828_vm0, %v5827_v0 }
  0xf5   :  { %v188_v35 = vpop.f32.mrb[0].mxu0 }
  0xf6   :  { %v4646_v36 = vpop.f32.mrb[1].mxu0  ;;  %v259_v54 = vmax.f32 %v188_v35, 0.0 }
  0xf7   :  { %v191_v37 = vpop.f32.mrb[2].mxu0 }
  0xf8   :  { %v4647_v38 = vpop.f32.mrb[3].mxu0  ;;  %v260_v59 = vmax.f32 %v191_v37, 0.0 }
  0xfd   :  { %v196_v39 = vpop.f32.mrb[4].mxu0 }
  0xfe   :  { %v4650_v40 = vpop.f32.mrb[5].mxu0  ;;  %v261_v63 = vmax.f32 %v196_v39, 0.0 }
  0xff   :  { %v199_v41 = vpop.f32.mrb[6].mxu0 }
 0x100   :  { %v4651_v42 = vpop.f32.mrb[7].mxu0  ;;  %v262_v6 = vmax.f32 %v199_v41, 0.0 }
 0x105   :  { %v204_v43 = vpop.f32.mrb[8].mxu0 }
 0x106   :  { %v4654_v44 = vpop.f32.mrb[9].mxu0  ;;  %v263_v10 = vmax.f32 %v204_v43, 0.0 }
 0x107   :  { %v207_v45 = vpop.f32.mrb[10].mxu0 }
 0x108   :  { %v4655_v46 = vpop.f32.mrb[11].mxu0  ;;  %v264_v16 = vmax.f32 %v207_v45, 0.0 }
 0x10d   :  { %v212_v47 = vpop.f32.mrb[12].mxu0 }
 0x10e   :  { %v4658_v48 = vpop.f32.mrb[13].mxu0  ;;  %v265_v20 = vmax.f32 %v212_v47, 0.0 }
 0x10f   :  { %v215_v49 = vpop.f32.mrb[14].mxu0 }
 0x110   :  { %v4659_v50 = vpop.f32.mrb[15].mxu0  ;;  %v266_v26 = vmax.f32 %v215_v49, 0.0 }
 0x115   :  { %v220_v51 = vpop.f32.mrb[16].mxu0 }
 0x116   :  { %v4662_v52 = vpop.f32.mrb[17].mxu0  ;;  %v267_v30 = vmax.f32 %v220_v51, 0.0 }
 0x117   :  { %v223_v53 = vpop.f32.mrb[18].mxu0 }
 0x118   :  { %v268_v55 = vmax.f32 %v223_v53, 0.0  ;;  %v4663_v56 = vpop.f32.mrb[19].mxu0 }
 0x11a   :  { %v472_v57 = vadd.f32 %v268_v55, %v259_v54 }
 0x11d   :  { %v228_v58 = vpop.f32.mrb[20].mxu0 }
 0x11e   :  { %v269_v60 = vmax.f32 %v228_v58, 0.0  ;;  %v4666_v61 = vpop.f32.mrb[21].mxu0 }
 0x11f   :  { %v231_v62 = vpop.f32.mrb[22].mxu0 }
 0x120   :  { %v473_v1 = vadd.f32 %v269_v60, %v260_v59  ;;  %v270_v2 = vmax.f32 %v231_v62, 0.0  ;;  %v4667_v3 = vpop.f32.mrb[23].mxu0 }
 0x122   :  { %v474_v4 = vadd.f32 %v270_v2, %v261_v63 }
 0x125   :  { %v236_v5 = vpop.f32.mrb[24].mxu0 }
 0x126   :  { %v271_v7 = vmax.f32 %v236_v5, 0.0  ;;  %v4670_v8 = vpop.f32.mrb[25].mxu0 }
 0x127   :  { %v239_v9 = vpop.f32.mrb[26].mxu0 }
 0x128   :  { %v475_v11 = vadd.f32 %v271_v7, %v262_v6  ;;  %v272_v12 = vmax.f32 %v239_v9, 0.0  ;;  %v4671_v13 = vpop.f32.mrb[27].mxu0 }
 0x12a   :  { %v476_v14 = vadd.f32 %v272_v12, %v263_v10 }
 0x12d   :  { %v244_v15 = vpop.f32.mrb[28].mxu0 }
 0x12e   :  { %v273_v17 = vmax.f32 %v244_v15, 0.0  ;;  %v4674_v18 = vpop.f32.mrb[29].mxu0 }
 0x12f   :  { %v247_v19 = vpop.f32.mrb[30].mxu0 }
 0x130   :  { %v477_v21 = vadd.f32 %v273_v17, %v264_v16  ;;  %v274_v22 = vmax.f32 %v247_v19, 0.0  ;;  %v4675_v23 = vpop.f32.mrb[31].mxu0 }
 0x132   :  { %v478_v24 = vadd.f32 %v274_v22, %v265_v20 }
 0x135   :  { %v252_v25 = vpop.f32.mrb[32].mxu0 }
 0x136   :  { %v275_v27 = vmax.f32 %v252_v25, 0.0  ;;  %v4678_v28 = vpop.f32.mrb[33].mxu0 }
 0x137   :  { %v255_v29 = vpop.f32.mrb[34].mxu0 }
 0x138   :  { %v479_v31 = vadd.f32 %v275_v27, %v266_v26  ;;  %v276_v32 = vmax.f32 %v255_v29, 0.0  ;;  %v4679_v33 = vpop.f32.mrb[35].mxu0 }
 0x139   :  { %v5632_v33 = vld [vmem:[%s7059_s2] sm:$0xff]  }
 0x13a   :  { %v480_v34 = vadd.f32 %v276_v32, %v267_v30 }
 0x13d   :  { %v383_v35 = vpop.f32.mrb[36].mxu0 }
 0x13e   :  { %v454_v36 = vmax.f32 %v383_v35, 0.0  ;;  %v4698_v37 = vpop.f32.mrb[37].mxu0 }
 0x13f   :  { %v386_v38 = vpop.f32.mrb[38].mxu0 }
 0x140   :  { %v481_v39 = vadd.f32 %v472_v57, %v454_v36  ;;  %v455_v40 = vmax.f32 %v386_v38, 0.0  ;;  %v4699_v41 = vpop.f32.mrb[39].mxu0 }
 0x142   :  { %v482_v42 = vadd.f32 %v473_v1, %v455_v40  ;;  %v5633_v40 = vld [vmem:[%s7059_s2 + $0x8] sm:$0xff]  }
 0x145   :  { %v391_v43 = vpop.f32.mrb[40].mxu0 }
 0x146   :  { %v456_v44 = vmax.f32 %v391_v43, 0.0  ;;  %v4702_v45 = vpop.f32.mrb[41].mxu0 }
 0x147   :  { %v394_v46 = vpop.f32.mrb[42].mxu0 }
 0x148   :  { %v483_v47 = vadd.f32 %v474_v4, %v456_v44  ;;  %v457_v48 = vmax.f32 %v394_v46, 0.0  ;;  %v4703_v49 = vpop.f32.mrb[43].mxu0 }
 0x14a   :  { %v484_v50 = vadd.f32 %v475_v11, %v457_v48 }
 0x14d   :  { %v399_v51 = vpop.f32.mrb[44].mxu0 }
 0x14e   :  { %v458_v52 = vmax.f32 %v399_v51, 0.0  ;;  %v4706_v53 = vpop.f32.mrb[45].mxu0  ;;  %v5634_v51 = vld [vmem:[%s7059_s2 + $0x10] sm:$0xff]  }
 0x14f   :  { %v402_v54 = vpop.f32.mrb[46].mxu0 }
 0x150   :  { %v485_v55 = vadd.f32 %v476_v14, %v458_v52  ;;  %v459_v56 = vmax.f32 %v402_v54, 0.0  ;;  %v4707_v58 = vpop.f32.mrb[47].mxu0 }
 0x152   :  { %v486_v59 = vadd.f32 %v477_v21, %v459_v56 }
 0x155   :  { %v407_v57 = vpop.f32.mrb[48].mxu0 }
 0x156   :  { %v460_v60 = vmax.f32 %v407_v57, 0.0  ;;  %v4710_v61 = vpop.f32.mrb[49].mxu0  ;;  %v5635_v57 = vld [vmem:[%s7059_s2 + $0x18] sm:$0xff]  }
 0x157   :  { %v410_v62 = vpop.f32.mrb[50].mxu0 }
 0x158   :  { %v487_v63 = vadd.f32 %v478_v24, %v460_v60  ;;  %v461_v1 = vmax.f32 %v410_v62, 0.0  ;;  %v4711_v2 = vpop.f32.mrb[51].mxu0 }
 0x15a   :  { %v6045_v3 = vadd.f32 %v479_v31, %v461_v1 }
 0x15d   :  { %v415_v4 = vpop.f32.mrb[52].mxu0 }
 0x15e   :  { %v462_v5 = vmax.f32 %v415_v4, 0.0  ;;  %v4714_v6 = vpop.f32.mrb[53].mxu0 }
 0x15f   :  { %v418_v7 = vpop.f32.mrb[54].mxu0  ;;  %v5636_v6 = vld [vmem:[%s7059_s2 + $0x20] sm:$0xff]  }
 0x160   :  { %v6047_v8 = vadd.f32 %v480_v34, %v462_v5  ;;  %v463_v9 = vmax.f32 %v418_v7, 0.0  ;;  %v4715_v10 = vpop.f32.mrb[55].mxu0 }
 0x162   :  { %v6049_v11 = vadd.f32 %v481_v39, %v463_v9  ;;  %v5637_v9 = vld [vmem:[%s7059_s2 + $0x28] sm:$0xff]  }
 0x164   :  { %510 = vst [vmem:[#allocation2] sm:$0xff] %v6049_v11 }
 0x165   :  { %v423_v12 = vpop.f32.mrb[56].mxu0 }
 0x166   :  { %v464_v13 = vmax.f32 %v423_v12, 0.0  ;;  %v4718_v14 = vpop.f32.mrb[57].mxu0 }
 0x167   :  { %v426_v15 = vpop.f32.mrb[58].mxu0 }
 0x168   :  { %v6052_v16 = vadd.f32 %v482_v42, %v464_v13  ;;  %v465_v17 = vmax.f32 %v426_v15, 0.0  ;;  %v4719_v18 = vpop.f32.mrb[59].mxu0 }
 0x16a   :  { %511 = vst [vmem:[#allocation2 + $0x8] sm:$0xff] %v6052_v16  ;;  %v6055_v19 = vadd.f32 %v483_v47, %v465_v17  ;;  %v528_v20 = vpack.c.bf16 %v6052_v16, %v6049_v11  ;;  %v5638_v17 = vld [vmem:[%s7059_s2 + $0x30] sm:$0xff]   ;;  %v5643_v11 = vld [vmem:[%s7059_s2 + $0x98] sm:$0xff]  }
 0x16c   :  { %512 = vst [vmem:[#allocation2 + $0x10] sm:$0xff] %v6055_v19  ;;  %v1309_v21 = vpack.c.bf16 %v6055_v19, %v6052_v16  ;;  %v5675_v16 = vld [vmem:[%s7059_s2 + $0x198] sm:$0xff]  }
 0x16d   :  { %v431_v22 = vpop.f32.mrb[60].mxu0 }
 0x16e   :  { %v466_v23 = vmax.f32 %v431_v22, 0.0  ;;  %v4722_v24 = vpop.f32.mrb[61].mxu0 }
 0x16f   :  { %v434_v25 = vpop.f32.mrb[62].mxu0 }
 0x170   :  { %v6062_v26 = vadd.f32 %v484_v50, %v466_v23  ;;  %v467_v27 = vmax.f32 %v434_v25, 0.0  ;;  %v4723_v28 = vpop.f32.mrb[63].mxu0  ;;  %v5639_v25 = vld [vmem:[%s7059_s2 + $0x38] sm:$0xff]  }
 0x171   :  { %v549_v31 = vld [vmem:[#allocation2 + $0x1] sm:$0xff] }
 0x172   :  { %513 = vst [vmem:[#allocation2 + $0x18] sm:$0xff] %v6062_v26  ;;  %v6065_v29 = vadd.f32 %v485_v55, %v467_v27  ;;  %v529_v30 = vpack.c.bf16 %v6062_v26, %v6055_v19  ;;  %v5676_v19 = vld [vmem:[%s7059_s2 + $0x1a0] sm:$0xff]  }
 0x173   :  { %v550_v32 = vld [vmem:[#allocation2 + $0x9] sm:$0xff] }
 0x174   :  { %514 = vst [vmem:[#allocation2 + $0x20] sm:$0xff] %v6065_v29  ;;  %v558_v34 = vpack.c.bf16 %v550_v32, %v549_v31  ;;  %v1310_v35 = vpack.c.bf16 %v6065_v29, %v6062_v26  ;;  %v6083_v44 = vld [vmem:[#allocation2 + $0xe] sm:$0xff]  ;;  %v5640_v31 = vld [vmem:[%s7059_s2 + $0x80] sm:$0xff]  }
 0x175   :  { %v439_v36 = vpop.f32.mrb[64].mxu0  ;;  %v5641_v32 = vld [vmem:[%s7059_s2 + $0x88] sm:$0xff]   ;;  %v5678_v26 = vld [vmem:[%s7059_s2 + $0x1b0] sm:$0xff]  }
 0x176   :  { %v468_v37 = vmax.f32 %v439_v36, 0.0  ;;  %v4726_v38 = vpop.f32.mrb[65].mxu0  ;;  %4749 = vmatmul.mubr.bf16.vlgmr.msra.gmra.mrb[72].mxu0 %v558_v34  ;;  %v5646_v34 = vld [vmem:[%s7059_s2 + $0xb0] sm:$0xff]   ;;  %v5647_v36 = vld [vmem:[%s7059_s2 + $0xb8] sm:$0xff]  }
 0x177   :  { %v442_v39 = vpop.f32.mrb[66].mxu0  ;;  %4769 = vmatpush3.bf16.msra.mxu0 %v5632_v33  ;;  %4752 = vmatprep.mubr.msk.bf16.mxu0 %vm5828_vm0, %v5827_v0  ;;  %v5642_v33 = vld [vmem:[%s7059_s2 + $0x90] sm:$0xff]  }
 0x178   :  { %v6080_v41 = vadd.f32 %v486_v59, %v468_v37  ;;  %v469_v42 = vmax.f32 %v442_v39, 0.0  ;;  %v4727_v43 = vpop.f32.mrb[67].mxu0  ;;  %4770 = vmatprep.subr.bf16.mxu0 %v5827_v0  ;;  %v6101_v59 = vld [vmem:[#allocation2 + $0x48] sm:$0xff] }
 0x179   :  { %v6085_v45 = vld [vmem:[#allocation2 + $0x16] sm:$0xff]  ;;  %v821_v38 = vld [vmem:[#allocation2 + $0xa] sm:$0xff]  ;;  %v820_v39 = vld [vmem:[#allocation2 + $0x2] sm:$0xff] }
 0x17a   :  { %515 = vst [vmem:[#allocation2 + $0x28] sm:$0xff] %v6080_v41  ;;  %v6088_v46 = vadd.f32 %v487_v63, %v469_v42  ;;  %v530_v47 = vpack.c.bf16 %v6080_v41, %v6065_v29  ;;  %v1789_v48 = vpack.c.bf16 %v6085_v45, %v6083_v44  ;;  %v551_v49 = vld [vmem:[#allocation2 + $0x11] sm:$0xff]  ;;  %v829_v42 = vpack.c.bf16 %v821_v38, %v820_v39  ;;  %v5649_v43 = vld [vmem:[%s7059_s2 + $0xc8] sm:$0xff]  }
 0x17b   :  { %4771 = vmatpush3.bf16.msra.mxu0 %v5633_v40  ;;  %v552_v50 = vld [vmem:[#allocation2 + $0x19] sm:$0xff]  ;;  %v5665_v39 = vld [vmem:[%s7059_s2 + $0x148] sm:$0xff]  }
 0x17c   :  { %516 = vst [vmem:[#allocation2 + $0x30] sm:$0xff] %v6088_v46  ;;  %v559_v52 = vpack.c.bf16 %v552_v50, %v551_v49  ;;  %4772 = vmatprep.subr.bf16.mxu0 %v5827_v0  ;;  %v1311_v53 = vpack.c.bf16 %v6088_v46, %v6080_v41  ;;  %v6112_v62 = vld [vmem:[#allocation2 + $0x1e] sm:$0xff]  ;;  %v822_v49 = vld [vmem:[#allocation2 + $0x12] sm:$0xff]  ;;  %v1313_v41 = vpack.c.bf16 %v6101_v59, %v6101_v59 }
 0x17d   :  { %v447_v54 = vpop.f32.mrb[68].mxu0  ;;  %v5648_v40 = vld [vmem:[%s7059_s2 + $0xc0] sm:$0xff]   ;;  %v5650_v50 = vld [vmem:[%s7059_s2 + $0xd0] sm:$0xff]   ;;  %v5679_v29 = vld [vmem:[%s7059_s2 + $0x1b8] sm:$0xff]  }
 0x17e   :  { %v470_v55 = vmax.f32 %v447_v54, 0.0  ;;  %v4730_v56 = vpop.f32.mrb[69].mxu0  ;;  %4753 = vmatmul.mubr.bf16.gmra.mrb[76].mxu0 %v559_v52  ;;  %v5651_v52 = vld [vmem:[%s7059_s2 + $0xd8] sm:$0xff]  }
 0x17f   :  { %v450_v58 = vpop.f32.mrb[70].mxu0  ;;  %4773 = vmatpush3.bf16.msra.mxu0 %v5634_v51  ;;  %4756 = vmatprep.mubr.msk.bf16.mxu0 %vm5828_vm0, %v6101_v59  ;;  %v5652_v56 = vld [vmem:[%s7059_s2 + $0xe0] sm:$0xff]  }
 0x180   :  { %v6109_v0 = vadd.f32 %v6045_v3, %v470_v55  ;;  %v471_v60 = vmax.f32 %v450_v58, 0.0  ;;  %v4731_v61 = vpop.f32.mrb[71].mxu0  ;;  %4774 = vmatprep.subr.bf16.mxu0 %v6101_v59 }
 0x181   :  { %v6114_v63 = vld [vmem:[#allocation2 + $0x26] sm:$0xff] }
 0x182   :  { %517 = vst [vmem:[#allocation2 + $0x38] sm:$0xff] %v6109_v0  ;;  %v6118_v1 = vadd.f32 %v6047_v8, %v471_v60  ;;  %v531_v2 = vpack.c.bf16 %v6109_v0, %v6088_v46  ;;  %v1790_v3 = vpack.c.bf16 %v6114_v63, %v6112_v62  ;;  %v553_v4 = vld [vmem:[#allocation2 + $0x21] sm:$0xff]  ;;  %v1461_v46 = vld [vmem:[#allocation2 + $0x14] sm:$0xff] }
 0x183   :  { %v554_v5 = vld [vmem:[#allocation2 + $0x29] sm:$0xff]  ;;  %4775 = vmatpush3.bf16.msra.mxu0 %v5635_v57 }
 0x184   :  { %518 = vst [vmem:[#allocation2 + $0x40] sm:$0xff] %v6118_v1  ;;  %v560_v7 = vpack.c.bf16 %v554_v5, %v553_v4  ;;  %4776 = vmatprep.subr.bf16.mxu0 %v6101_v59  ;;  %v1312_v8 = vpack.c.bf16 %v6118_v1, %v6109_v0  ;;  %v6137_v10 = vld [vmem:[#allocation2 + $0x2e] sm:$0xff]  ;;  %v532_v37 = vpack.c.bf16 %v6118_v1, %v6118_v1  ;;  %v824_v55 = vld [vmem:[#allocation2 + $0x22] sm:$0xff]  ;;  %v5655_v5 = vld [vmem:[%s7059_s2 + $0xf8] sm:$0xff]  }
 0x185   :  { %v825_v54 = vld [vmem:[#allocation2 + $0x2a] sm:$0xff]  ;;  %v5680_v0 = vld [vmem:[%s7059_s2 + $0x1c0] sm:$0xff]  }
 0x186   :  { %4757 = vmatmul.mubr.bf16.gmra.mrb[80].mxu0 %v560_v7  ;;  %v831_v58 = vpack.c.bf16 %v825_v54, %v824_v55  ;;  %v5653_v57 = vld [vmem:[%s7059_s2 + $0xe8] sm:$0xff]  }
 0x187   :  { %4777 = vmatpush3.bf16.msra.mxu0 %v5636_v6  ;;  %4760 = vmatprep.mubr.msk.bf16.mxu0 %vm5828_vm0, %v6101_v59  ;;  %v5669_v55 = vld [vmem:[%s7059_s2 + $0x168] sm:$0xff]  }
 0x188   :  { %4778 = vmatprep.subr.bf16.mxu0 %v6101_v59 }
 0x189   :  { %v6139_v12 = vld [vmem:[#allocation2 + $0x36] sm:$0xff] }
 0x18a   :  { %v1791_v13 = vpack.c.bf16 %v6139_v12, %v6137_v10  ;;  %v555_v14 = vld [vmem:[#allocation2 + $0x31] sm:$0xff] }
 0x18b   :  { %v556_v15 = vld [vmem:[#allocation2 + $0x39] sm:$0xff]  ;;  %4779 = vmatpush3.bf16.msra.mxu0 %v5637_v9  ;;  %v6149_v23 = vld [vmem:[#allocation2 + $0x46] sm:$0xff] }
 0x18c   :  { %v561_v18 = vpack.c.bf16 %v556_v15, %v555_v14  ;;  %4780 = vmatprep.subr.bf16.mxu0 %v6101_v59  ;;  %v6147_v22 = vld [vmem:[#allocation2 + $0x3e] sm:$0xff]  ;;  %v826_v61 = vld [vmem:[#allocation2 + $0x32] sm:$0xff]  ;;  %v980_v9 = vld [vmem:[#allocation2 + $0x6] sm:$0xff] }
 0x18d   :  { %v1792_v24 = vpack.c.bf16 %v6149_v23, %v6147_v22  ;;  %v557_v27 = vld [vmem:[#allocation2 + $0x41] sm:$0xff]  ;;  %v989_v15 = vpack.c.bf16 %v6083_v44, %v980_v9  ;;  %v1788_v44 = vld [vmem:[#allocation2 + $0x4e] sm:$0xff] }
 0x18e   :  { %4761 = vmatmul.mubr.bf16.gmra.mrb[84].mxu0 %v561_v18  ;;  %v562_v28 = vpack.c.bf16 %v557_v27, %v557_v27  ;;  %v827_v60 = vld [vmem:[#allocation2 + $0x3a] sm:$0xff]  ;;  %v828_v6 = vld [vmem:[#allocation2 + $0x42] sm:$0xff]  ;;  %v5658_v18 = vld [vmem:[%s7059_s2 + $0x110] sm:$0xff]  }
 0x18f   :  { %4764 = vmatprep.mubr.msk.bf16.mxu0 %vm5828_vm0, %v6101_v59  ;;  %4781 = vmatpush3.bf16.msra.mxu0 %v5638_v17  ;;  %v832_v4 = vpack.c.bf16 %v827_v60, %v826_v61  ;;  %v833_v7 = vpack.c.bf16 %v828_v6, %v828_v6  ;;  %v5656_v14 = vld [vmem:[%s7059_s2 + $0x100] sm:$0xff]   ;;  %v5657_v17 = vld [vmem:[%s7059_s2 + $0x108] sm:$0xff]   ;;  %v5659_v27 = vld [vmem:[%s7059_s2 + $0x118] sm:$0xff]  }
 0x190   :  { %4782 = vmatprep.subr.bf16.mxu0 %v6101_v59  ;;  %v5671_v61 = vld [vmem:[%s7059_s2 + $0x178] sm:$0xff]   ;;  %v5673_v6 = vld [vmem:[%s7059_s2 + $0x188] sm:$0xff]  }
 0x191   :  { %v1463_v9 = vld [vmem:[#allocation2 + $0x24] sm:$0xff] }
 0x193   :  { %4783 = vmatpush3.bf16.msra.mxu0 %v5639_v25  ;;  %v990_v25 = vpack.c.bf16 %v6112_v62, %v6085_v45  ;;  %v1793_v45 = vpack.c.bf16 %v1788_v44, %v1788_v44  ;;  %v5698_v62 = vld [vmem:[%s7060_s3 + $0x50] sm:$0xff]   ;;  %v5725_v44 = vld [vmem:[%s7060_s3 + $0xe8] sm:$0xff]  }
 0x194   :  { %4804 = vmatprep.subr.bf16.mxu0 %v6101_v59 }
 0x196   :  { %4765 = vmatmul.mubr.bf16.gmra.mrb[88].mxu0 %v562_v28  ;;  %v5660_v28 = vld [vmem:[%s7059_s2 + $0x120] sm:$0xff]  }
 0x197   :  { %4784 = vmatprep.mubr.msk.bf16.mxu0 %vm5828_vm0, %v6101_v59 }
 0x19e   :  { %4785 = vmatmul.mubr.bf16.vlgmr.msra.gmra.mrb[72].mxu0 %v528_v20  ;;  %v5644_v20 = vld [vmem:[%s7059_s2 + $0xa0] sm:$0xff]  }
 0x19f   :  { %4805 = vmatpush3.bf16.msra.mxu0 %v5640_v31  ;;  %4788 = vmatprep.mubr.msk.bf16.mxu0 %vm5828_vm0, %v6101_v59  ;;  %v991_v31 = vpack.c.bf16 %v6137_v10, %v6114_v63  ;;  %v5699_v63 = vld [vmem:[%s7060_s3 + $0x58] sm:$0xff]   ;;  %v5701_v10 = vld [vmem:[%s7060_s3 + $0x68] sm:$0xff]  }
 0x1a0   :  { %4806 = vmatprep.subr.bf16.mxu0 %v6101_v59 }
 0x1a3   :  { %4807 = vmatpush3.bf16.msra.mxu0 %v5641_v32  ;;  %v5661_v32 = vld [vmem:[%s7059_s2 + $0x128] sm:$0xff]  }
 0x1a4   :  { %4808 = vmatprep.subr.bf16.mxu0 %v6101_v59 }
 0x1a6   :  { %4789 = vmatmul.mubr.bf16.gmra.mrb[76].mxu0 %v529_v30  ;;  %v5645_v30 = vld [vmem:[%s7059_s2 + $0xa8] sm:$0xff]  }
 0x1a7   :  { %4809 = vmatpush3.bf16.msra.mxu0 %v5642_v33  ;;  %4792 = vmatprep.mubr.msk.bf16.mxu0 %vm5828_vm0, %v6101_v59  ;;  %v5662_v33 = vld [vmem:[%s7059_s2 + $0x130] sm:$0xff]  }
 0x1a8   :  { %4810 = vmatprep.subr.bf16.mxu0 %v6101_v59 }
 0x1ab   :  { %4811 = vmatpush3.bf16.msra.mxu0 %v5643_v11  ;;  %v992_v11 = vpack.c.bf16 %v6147_v22, %v6139_v12  ;;  %v5702_v12 = vld [vmem:[%s7060_s3 + $0x70] sm:$0xff]  }
 0x1ac   :  { %4812 = vmatprep.subr.bf16.mxu0 %v6101_v59 }
 0x1ae   :  { %4793 = vmatmul.mubr.bf16.gmra.mrb[80].mxu0 %v530_v47  ;;  %v823_v47 = vld [vmem:[#allocation2 + $0x1a] sm:$0xff] }
 0x1af   :  { %4813 = vmatpush3.bf16.msra.mxu0 %v5644_v20  ;;  %4796 = vmatprep.mubr.msk.bf16.mxu0 %vm5828_vm0, %v6101_v59  ;;  %v830_v51 = vpack.c.bf16 %v823_v47, %v822_v49  ;;  %v5663_v20 = vld [vmem:[%s7059_s2 + $0x138] sm:$0xff]  }
 0x1b0   :  { %4814 = vmatprep.subr.bf16.mxu0 %v6101_v59  ;;  %v5667_v49 = vld [vmem:[%s7059_s2 + $0x158] sm:$0xff]  }
 0x1b3   :  { %4815 = vmatpush3.bf16.msra.mxu0 %v5645_v30  ;;  %v993_v30 = vpack.c.bf16 %v6149_v23, %v6149_v23 }
 0x1b4   :  { %4816 = vmatprep.subr.bf16.mxu0 %v6101_v59 }
 0x1b6   :  { %4797 = vmatmul.mubr.bf16.gmra.mrb[84].mxu0 %v531_v2  ;;  %v5654_v2 = vld [vmem:[%s7059_s2 + $0xf0] sm:$0xff]  }
 0x1b7   :  { %4800 = vmatprep.mubr.msk.bf16.mxu0 %vm5828_vm0, %v6101_v59  ;;  %4817 = vmatpush3.bf16.msra.mxu0 %v5646_v34  ;;  %v1141_v34 = vld [vmem:[#allocation2 + $0xf] sm:$0xff] }
 0x1b8   :  { %4818 = vmatprep.subr.bf16.mxu0 %v6101_v59 }
 0x1bb   :  { %4819 = vmatpush3.bf16.msra.mxu0 %v5647_v36  ;;  %v1140_v36 = vld [vmem:[#allocation2 + $0x7] sm:$0xff] }
 0x1bc   :  { %4840 = vmatprep.subr.bf16.mxu0 %v6101_v59  ;;  %v1149_v38 = vpack.c.bf16 %v1141_v34, %v1140_v36  ;;  %v1468_v34 = vld [vmem:[#allocation2 + $0x4c] sm:$0xff]  ;;  %v5687_v36 = vld [vmem:[%s7059_s2 + $0x1f8] sm:$0xff]  }
 0x1be   :  { %4801 = vmatmul.mubr.bf16.gmra.mrb[88].mxu0 %v532_v37  ;;  %v5664_v37 = vld [vmem:[%s7059_s2 + $0x140] sm:$0xff]  }
 0x1bf   :  { %4820 = vmatprep.mubr.msk.bf16.mxu0 %vm5828_vm0, %v6101_v59 }
 0x1c6   :  { %4821 = vmatmul.mubr.bf16.vlgmr.msra.gmra.mrb[72].mxu0 %v829_v42  ;;  %v1142_v42 = vld [vmem:[#allocation2 + $0x17] sm:$0xff] }
 0x1c7   :  { %4841 = vmatpush3.bf16.msra.mxu0 %v5648_v40  ;;  %4824 = vmatprep.mubr.msk.bf16.mxu0 %vm5828_vm0, %v6101_v59  ;;  %v1143_v40 = vld [vmem:[#allocation2 + $0x1f] sm:$0xff] }
 0x1c8   :  { %4842 = vmatprep.subr.bf16.mxu0 %v6101_v59  ;;  %v1150_v47 = vpack.c.bf16 %v1143_v40, %v1142_v42  ;;  %v5688_v40 = vld [vmem:[%s7059_s2 + $0x200] sm:$0xff]  }
 0x1cb   :  { %4843 = vmatpush3.bf16.msra.mxu0 %v5649_v43  ;;  %v5666_v43 = vld [vmem:[%s7059_s2 + $0x150] sm:$0xff]  }
 0x1cc   :  { %4844 = vmatprep.subr.bf16.mxu0 %v6101_v59 }
 0x1ce   :  { %4825 = vmatmul.mubr.bf16.gmra.mrb[76].mxu0 %v830_v51  ;;  %v1144_v51 = vld [vmem:[#allocation2 + $0x27] sm:$0xff] }
 0x1cf   :  { %4845 = vmatpush3.bf16.msra.mxu0 %v5650_v50  ;;  %4828 = vmatprep.mubr.msk.bf16.mxu0 %vm5828_vm0, %v6101_v59  ;;  %v1145_v50 = vld [vmem:[#allocation2 + $0x2f] sm:$0xff] }
 0x1d0   :  { %4846 = vmatprep.subr.bf16.mxu0 %v6101_v59  ;;  %v1151_v54 = vpack.c.bf16 %v1145_v50, %v1144_v51  ;;  %v5690_v50 = vld [vmem:[%s7059_s2 + $0x210] sm:$0xff]  }
 0x1d3   :  { %4847 = vmatpush3.bf16.msra.mxu0 %v5651_v52  ;;  %v5668_v52 = vld [vmem:[%s7059_s2 + $0x160] sm:$0xff]  }
 0x1d4   :  { %4848 = vmatprep.subr.bf16.mxu0 %v6101_v59 }
 0x1d6   :  { %4829 = vmatmul.mubr.bf16.gmra.mrb[80].mxu0 %v831_v58  ;;  %v1146_v58 = vld [vmem:[#allocation2 + $0x37] sm:$0xff] }
 0x1d7   :  { %4849 = vmatpush3.bf16.msra.mxu0 %v5652_v56  ;;  %4832 = vmatprep.mubr.msk.bf16.mxu0 %vm5828_vm0, %v6101_v59  ;;  %v1147_v56 = vld [vmem:[#allocation2 + $0x3f] sm:$0xff] }
 0x1d8   :  { %4850 = vmatprep.subr.bf16.mxu0 %v6101_v59  ;;  %v1152_v60 = vpack.c.bf16 %v1147_v56, %v1146_v58  ;;  %v1624_v56 = vld [vmem:[#allocation2 + $0x2d] sm:$0xff]  ;;  %v5692_v58 = vld [vmem:[%s7059_s2 + $0x220] sm:$0xff]  }
 0x1db   :  { %4851 = vmatpush3.bf16.msra.mxu0 %v5653_v57  ;;  %v5670_v57 = vld [vmem:[%s7059_s2 + $0x170] sm:$0xff]  }
 0x1dc   :  { %4852 = vmatprep.subr.bf16.mxu0 %v6101_v59 }
 0x1de   :  { %4833 = vmatmul.mubr.bf16.gmra.mrb[84].mxu0 %v832_v4 }
 0x1df   :  { %4836 = vmatprep.mubr.msk.bf16.mxu0 %vm5828_vm0, %v6101_v59  ;;  %4853 = vmatpush3.bf16.msra.mxu0 %v5654_v2  ;;  %v1148_v2 = vld [vmem:[#allocation2 + $0x47] sm:$0xff] }
 0x1e0   :  { %4854 = vmatprep.subr.bf16.mxu0 %v6101_v59  ;;  %v1153_v4 = vpack.c.bf16 %v1148_v2, %v1148_v2  ;;  %v5694_v2 = vld [vmem:[%s7059_s2 + $0x230] sm:$0xff]  }
 0x1e3   :  { %4855 = vmatpush3.bf16.msra.mxu0 %v5655_v5  ;;  %v5672_v5 = vld [vmem:[%s7059_s2 + $0x180] sm:$0xff]  }
 0x1e4   :  { %4876 = vmatprep.subr.bf16.mxu0 %v6101_v59 }
 0x1e6   :  { %4837 = vmatmul.mubr.bf16.gmra.mrb[88].mxu0 %v833_v7  ;;  %v5674_v7 = vld [vmem:[%s7059_s2 + $0x190] sm:$0xff]  }
 0x1e7   :  { %4856 = vmatprep.mubr.msk.bf16.mxu0 %vm5828_vm0, %v6101_v59 }
 0x1ee   :  { %4857 = vmatmul.mubr.bf16.vlgmr.msra.gmra.mrb[72].mxu0 %v989_v15  ;;  %v5682_v15 = vld [vmem:[%s7059_s2 + $0x1d0] sm:$0xff]  }
 0x1ef   :  { %4877 = vmatpush3.bf16.msra.mxu0 %v5656_v14  ;;  %4860 = vmatprep.mubr.msk.bf16.mxu0 %vm5828_vm0, %v6101_v59  ;;  %v1462_v14 = vld [vmem:[#allocation2 + $0x1c] sm:$0xff] }
 0x1f0   :  { %4878 = vmatprep.subr.bf16.mxu0 %v6101_v59 }
 0x1f3   :  { %4879 = vmatpush3.bf16.msra.mxu0 %v5657_v17  ;;  %v1470_v17 = vpack.c.bf16 %v1463_v9, %v1462_v14 }
 0x1f4   :  { %4880 = vmatprep.subr.bf16.mxu0 %v6101_v59 }
 0x1f6   :  { %4861 = vmatmul.mubr.bf16.gmra.mrb[76].mxu0 %v990_v25  ;;  %v1465_v25 = vld [vmem:[#allocation2 + $0x34] sm:$0xff] }
 0x1f7   :  { %4881 = vmatpush3.bf16.msra.mxu0 %v5658_v18  ;;  %4864 = vmatprep.mubr.msk.bf16.mxu0 %vm5828_vm0, %v6101_v59  ;;  %v5683_v18 = vld [vmem:[%s7059_s2 + $0x1d8] sm:$0xff]  }
 0x1f8   :  { %4882 = vmatprep.subr.bf16.mxu0 %v6101_v59 }
 0x1fb   :  { %4883 = vmatpush3.bf16.msra.mxu0 %v5659_v27  ;;  %v1464_v27 = vld [vmem:[#allocation2 + $0x2c] sm:$0xff] }
 0x1fc   :  { %4884 = vmatprep.subr.bf16.mxu0 %v6101_v59 }
 0x1fe   :  { %4865 = vmatmul.mubr.bf16.gmra.mrb[80].mxu0 %v991_v31  ;;  %v1471_v31 = vpack.c.bf16 %v1465_v25, %v1464_v27 }
 0x1ff   :  { %4885 = vmatpush3.bf16.msra.mxu0 %v5660_v28  ;;  %4868 = vmatprep.mubr.msk.bf16.mxu0 %vm5828_vm0, %v6101_v59  ;;  %v5684_v28 = vld [vmem:[%s7059_s2 + $0x1e0] sm:$0xff]  }
 0x200   :  { %4886 = vmatprep.subr.bf16.mxu0 %v6101_v59 }
 0x203   :  { %4887 = vmatpush3.bf16.msra.mxu0 %v5661_v32  ;;  %v5685_v32 = vld [vmem:[%s7059_s2 + $0x1e8] sm:$0xff]  }
 0x204   :  { %4888 = vmatprep.subr.bf16.mxu0 %v6101_v59 }
 0x206   :  { %4869 = vmatmul.mubr.bf16.gmra.mrb[84].mxu0 %v992_v11  ;;  %v1467_v11 = vld [vmem:[#allocation2 + $0x44] sm:$0xff] }
 0x207   :  { %4872 = vmatprep.mubr.msk.bf16.mxu0 %vm5828_vm0, %v6101_v59  ;;  %4889 = vmatpush3.bf16.msra.mxu0 %v5662_v33  ;;  %v1466_v33 = vld [vmem:[#allocation2 + $0x3c] sm:$0xff] }
 0x208   :  { %4890 = vmatprep.subr.bf16.mxu0 %v6101_v59 }
 0x20b   :  { %4891 = vmatpush3.bf16.msra.mxu0 %v5663_v20  ;;  %v5686_v20 = vld [vmem:[%s7059_s2 + $0x1f0] sm:$0xff]  }
 0x20c   :  { %4912 = vmatprep.subr.bf16.mxu0 %v6101_v59 }
 0x20e   :  { %4873 = vmatmul.mubr.bf16.gmra.mrb[88].mxu0 %v993_v30  ;;  %v1472_v30 = vpack.c.bf16 %v1467_v11, %v1466_v33  ;;  %v5705_v11 = vld [vmem:[%s7060_s3 + $0x8] sm:$0xff]  }
 0x20f   :  { %4892 = vmatprep.mubr.msk.bf16.mxu0 %vm5828_vm0, %v6101_v59 }
 0x216   :  { %4893 = vmatmul.mubr.bf16.vlgmr.msra.gmra.mrb[72].mxu0 %v1149_v38  ;;  %v1621_v38 = vld [vmem:[#allocation2 + $0x15] sm:$0xff] }
 0x217   :  { %4913 = vmatpush3.bf16.msra.mxu0 %v5664_v37  ;;  %4896 = vmatprep.mubr.msk.bf16.mxu0 %vm5828_vm0, %v6101_v59  ;;  %v1473_v37 = vpack.c.bf16 %v1468_v34, %v1468_v34 }
 0x218   :  { %4914 = vmatprep.subr.bf16.mxu0 %v6101_v59 }
 0x21b   :  { %4915 = vmatpush3.bf16.msra.mxu0 %v5665_v39  ;;  %v1620_v39 = vld [vmem:[#allocation2 + $0xd] sm:$0xff] }
 0x21c   :  { %4916 = vmatprep.subr.bf16.mxu0 %v6101_v59  ;;  %v1629_v42 = vpack.c.bf16 %v1621_v38, %v1620_v39  ;;  %v5707_v38 = vld [vmem:[%s7060_s3 + $0x18] sm:$0xff]   ;;  %v5708_v39 = vld [vmem:[%s7060_s3 + $0x20] sm:$0xff]  }
 0x21e   :  { %4897 = vmatmul.mubr.bf16.gmra.mrb[76].mxu0 %v1150_v47  ;;  %v1623_v47 = vld [vmem:[#allocation2 + $0x25] sm:$0xff] }
 0x21f   :  { %4917 = vmatpush3.bf16.msra.mxu0 %v5666_v43  ;;  %4900 = vmatprep.mubr.msk.bf16.mxu0 %vm5828_vm0, %v6101_v59  ;;  %v5689_v43 = vld [vmem:[%s7059_s2 + $0x208] sm:$0xff]  }
 0x220   :  { %4918 = vmatprep.subr.bf16.mxu0 %v6101_v59 }
 0x223   :  { %4919 = vmatpush3.bf16.msra.mxu0 %v5667_v49  ;;  %v1622_v49 = vld [vmem:[#allocation2 + $0x1d] sm:$0xff] }
 0x224   :  { %4920 = vmatprep.subr.bf16.mxu0 %v6101_v59  ;;  %v1630_v51 = vpack.c.bf16 %v1623_v47, %v1622_v49  ;;  %v5712_v49 = vld [vmem:[%s7060_s3 + $0x80] sm:$0xff]  }
 0x226   :  { %4901 = vmatmul.mubr.bf16.gmra.mrb[80].mxu0 %v1151_v54  ;;  %v6468_v54 = vld [vmem:[#allocation2 + $0x48] sm:$0xff] }
 0x227   :  { %4921 = vmatpush3.bf16.msra.mxu0 %v5668_v52  ;;  %4904 = vmatprep.mubr.msk.bf16.mxu0 %vm5828_vm0, %v6101_v59  ;;  %v5691_v52 = vld [vmem:[%s7059_s2 + $0x218] sm:$0xff]  }
 0x228   :  { %4922 = vmatprep.subr.bf16.mxu0 %v6101_v59 }
 0x22b   :  { %4923 = vmatpush3.bf16.msra.mxu0 %v5669_v55  ;;  %v1625_v55 = vld [vmem:[#allocation2 + $0x35] sm:$0xff] }
 0x22c   :  { %4924 = vmatprep.subr.bf16.mxu0 %v6101_v59 }
 0x22e   :  { %4905 = vmatmul.mubr.bf16.gmra.mrb[84].mxu0 %v1152_v60  ;;  %v1626_v60 = vld [vmem:[#allocation2 + $0x3d] sm:$0xff] }
 0x22f   :  { %4908 = vmatprep.mubr.msk.bf16.mxu0 %vm5828_vm0, %v6101_v59  ;;  %4925 = vmatpush3.bf16.msra.mxu0 %v5670_v57  ;;  %v5693_v57 = vld [vmem:[%s7059_s2 + $0x228] sm:$0xff]  }
 0x230   :  { %4926 = vmatprep.subr.bf16.mxu0 %v6101_v59 }
 0x233   :  { %4927 = vmatpush3.bf16.msra.mxu0 %v5671_v61  ;;  %v1627_v61 = vld [vmem:[#allocation2 + $0x45] sm:$0xff] }
 0x234   :  { %4948 = vmatprep.subr.bf16.mxu0 %v6101_v59 }
 0x236   :  { %4909 = vmatmul.mubr.bf16.gmra.mrb[88].mxu0 %v1153_v4  ;;  %v1632_v4 = vpack.c.bf16 %v1627_v61, %v1626_v60  ;;  %v5720_v61 = vld [vmem:[%s7060_s3 + $0xc0] sm:$0xff]  }
 0x237   :  { %4928 = vmatprep.mubr.msk.bf16.mxu0 %vm5828_vm0, %v6101_v59 }
 0x23e   :  { %4929 = vmatmul.mubr.bf16.vlgmr.msra.gmra.mrb[72].mxu0 %v1309_v21  ;;  %v5677_v21 = vld [vmem:[%s7059_s2 + $0x1a8] sm:$0xff]  }
 0x23f   :  { %4949 = vmatpush3.bf16.msra.mxu0 %v5672_v5  ;;  %4932 = vmatprep.mubr.msk.bf16.mxu0 %vm5828_vm0, %v6101_v59  ;;  %v1628_v5 = vld [vmem:[#allocation2 + $0x4d] sm:$0xff] }
 0x240   :  { %4950 = vmatprep.subr.bf16.mxu0 %v6101_v59 }
 0x243   :  { %4951 = vmatpush3.bf16.msra.mxu0 %v5673_v6  ;;  %v5695_v6 = vld [vmem:[%s7059_s2 + $0x238] sm:$0xff]  }
 0x244   :  { %4952 = vmatprep.subr.bf16.mxu0 %v6101_v59 }
 0x246   :  { %4933 = vmatmul.mubr.bf16.gmra.mrb[76].mxu0 %v1310_v35  ;;  %v5696_v35 = vld [vmem:[%s7060_s3 + $0x40] sm:$0xff]  }
 0x247   :  { %4953 = vmatpush3.bf16.msra.mxu0 %v5674_v7  ;;  %4936 = vmatprep.mubr.msk.bf16.mxu0 %vm5828_vm0, %v6101_v59  ;;  %v1633_v7 = vpack.c.bf16 %v1628_v5, %v1628_v5  ;;  %v5722_v5 = vld [vmem:[%s7060_s3 + $0xd0] sm:$0xff]  }
 0x248   :  { %4954 = vmatprep.subr.bf16.mxu0 %v6101_v59  ;;  %5057 = vmatpush3.bf16.msra.mxu1 %v5696_v35 }
 0x249   :  { %5058 = vmatprep.subr.bf16.mxu1 %v6101_v59 }
 0x24b   :  { %4955 = vmatpush3.bf16.msra.mxu0 %v5675_v16 }
 0x24c   :  { %4956 = vmatprep.subr.bf16.mxu0 %v6101_v59 }
 0x24e   :  { %4937 = vmatmul.mubr.bf16.gmra.mrb[80].mxu0 %v1311_v53  ;;  %v1460_v53 = vld [vmem:[#allocation2 + $0xc] sm:$0xff] }
 0x24f   :  { %4957 = vmatpush3.bf16.msra.mxu0 %v5676_v19  ;;  %4940 = vmatprep.mubr.msk.bf16.mxu0 %vm5828_vm0, %v6101_v59  ;;  %v1469_v1 = vpack.c.bf16 %v1461_v46, %v1460_v53 }
 0x250   :  { %4958 = vmatprep.subr.bf16.mxu0 %v6101_v59 }
 0x253   :  { %4959 = vmatpush3.bf16.msra.mxu0 %v5677_v21 }
 0x254   :  { %4960 = vmatprep.subr.bf16.mxu0 %v6101_v59 }
 0x256   :  { %4941 = vmatmul.mubr.bf16.gmra.mrb[84].mxu0 %v1312_v8  ;;  %v5681_v8 = vld [vmem:[%s7059_s2 + $0x1c8] sm:$0xff]  }
 0x257   :  { %4944 = vmatprep.mubr.msk.bf16.mxu0 %vm5828_vm0, %v6101_v59  ;;  %4961 = vmatpush3.bf16.msra.mxu0 %v5678_v26 }
 0x258   :  { %4962 = vmatprep.subr.bf16.mxu0 %v6101_v59 }
 0x25b   :  { %4963 = vmatpush3.bf16.msra.mxu0 %v5679_v29 }
 0x25c   :  { %4984 = vmatprep.subr.bf16.mxu0 %v6101_v59 }
 0x25e   :  { %4945 = vmatmul.mubr.bf16.gmra.mrb[88].mxu0 %v1313_v41 }
 0x25f   :  { %4964 = vmatprep.mubr.msk.bf16.mxu0 %vm5828_vm0, %v6101_v59 }
 0x266   :  { %4965 = vmatmul.mubr.bf16.vlgmr.msra.gmra.mrb[72].mxu0 %v1469_v1 }
 0x267   :  { %4985 = vmatpush3.bf16.msra.mxu0 %v5680_v0  ;;  %4968 = vmatprep.mubr.msk.bf16.mxu0 %vm5828_vm0, %v6101_v59 }
 0x268   :  { %4986 = vmatprep.subr.bf16.mxu0 %v6101_v59 }
 0x26b   :  { %4987 = vmatpush3.bf16.msra.mxu0 %v5681_v8 }
 0x26c   :  { %4988 = vmatprep.subr.bf16.mxu0 %v6101_v59 }
 0x26e   :  { %4969 = vmatmul.mubr.bf16.gmra.mrb[76].mxu0 %v1470_v17 }
 0x26f   :  { %4989 = vmatpush3.bf16.msra.mxu0 %v5682_v15  ;;  %4972 = vmatprep.mubr.msk.bf16.mxu0 %vm5828_vm0, %v6101_v59 }
 0x270   :  { %4990 = vmatprep.subr.bf16.mxu0 %v6101_v59 }
 0x273   :  { %4991 = vmatpush3.bf16.msra.mxu0 %v5683_v18 }
 0x274   :  { %4992 = vmatprep.subr.bf16.mxu0 %v6101_v59 }
 0x276   :  { %4973 = vmatmul.mubr.bf16.gmra.mrb[80].mxu0 %v1471_v31 }
 0x277   :  { %4993 = vmatpush3.bf16.msra.mxu0 %v5684_v28  ;;  %4976 = vmatprep.mubr.msk.bf16.mxu0 %vm5828_vm0, %v6101_v59  ;;  %v5704_v28 = vld [vmem:[%s7060_s3] sm:$0xff]  }
 0x278   :  { %4994 = vmatprep.subr.bf16.mxu0 %v6101_v59 }
 0x27b   :  { %4995 = vmatpush3.bf16.msra.mxu0 %v5685_v32 }
 0x27c   :  { %4996 = vmatprep.subr.bf16.mxu0 %v6101_v59 }
 0x27e   :  { %4977 = vmatmul.mubr.bf16.gmra.mrb[84].mxu0 %v1472_v30 }
 0x27f   :  { %4980 = vmatprep.mubr.msk.bf16.mxu0 %vm5828_vm0, %v6101_v59  ;;  %4997 = vmatpush3.bf16.msra.mxu0 %v5686_v20 }
 0x280   :  { %4998 = vmatprep.subr.bf16.mxu0 %v6101_v59 }
 0x283   :  { %4999 = vmatpush3.bf16.msra.mxu0 %v5687_v36  ;;  %v5706_v36 = vld [vmem:[%s7060_s3 + $0x10] sm:$0xff]  }
 0x284   :  { %5020 = vmatprep.subr.bf16.mxu0 %v6101_v59 }
 0x286   :  { %4981 = vmatmul.mubr.bf16.gmra.mrb[88].mxu0 %v1473_v37 }
 0x287   :  { %5000 = vmatprep.mubr.msk.bf16.mxu0 %vm5828_vm0, %v6101_v59 }
 0x28e   :  { %5001 = vmatmul.mubr.bf16.vlgmr.msra.gmra.mrb[72].mxu0 %v1629_v42  ;;  %v5710_v42 = vld [vmem:[%s7060_s3 + $0x30] sm:$0xff]  }
 0x28f   :  { %5021 = vmatpush3.bf16.msra.mxu0 %v5688_v40  ;;  %5004 = vmatprep.mubr.msk.bf16.mxu0 %vm5828_vm0, %v6101_v59  ;;  %v5709_v40 = vld [vmem:[%s7060_s3 + $0x28] sm:$0xff]  }
 0x290   :  { %5022 = vmatprep.subr.bf16.mxu0 %v6101_v59 }
 0x293   :  { %5023 = vmatpush3.bf16.msra.mxu0 %v5689_v43  ;;  %v5711_v43 = vld [vmem:[%s7060_s3 + $0x38] sm:$0xff]  }
 0x294   :  { %5024 = vmatprep.subr.bf16.mxu0 %v6101_v59  ;;  %v1631_v59 = vpack.c.bf16 %v1625_v55, %v1624_v56  ;;  %v5715_v55 = vld [vmem:[%s7060_s3 + $0x98] sm:$0xff]   ;;  %v5716_v56 = vld [vmem:[%s7060_s3 + $0xa0] sm:$0xff]  }
 0x296   :  { %5005 = vmatmul.mubr.bf16.gmra.mrb[76].mxu0 %v1630_v51  ;;  %v5713_v51 = vld [vmem:[%s7060_s3 + $0x88] sm:$0xff]  }
 0x297   :  { %5025 = vmatpush3.bf16.msra.mxu0 %v5690_v50  ;;  %5008 = vmatprep.mubr.msk.bf16.mxu0 %vm5828_vm0, %v6468_v54 }
 0x298   :  { %5026 = vmatprep.subr.bf16.mxu0 %v6468_v54 }
 0x29b   :  { %5027 = vmatpush3.bf16.msra.mxu0 %v5691_v52  ;;  %v5714_v52 = vld [vmem:[%s7060_s3 + $0x90] sm:$0xff]  }
 0x29c   :  { %5028 = vmatprep.subr.bf16.mxu0 %v6468_v54 }
 0x29e   :  { %5009 = vmatmul.mubr.bf16.gmra.mrb[80].mxu0 %v1631_v59  ;;  %v5718_v59 = vld [vmem:[%s7060_s3 + $0xb0] sm:$0xff]  }
 0x29f   :  { %5029 = vmatpush3.bf16.msra.mxu0 %v5692_v58  ;;  %5012 = vmatprep.mubr.msk.bf16.mxu0 %vm5828_vm0, %v6468_v54  ;;  %v5717_v58 = vld [vmem:[%s7060_s3 + $0xa8] sm:$0xff]  }
 0x2a0   :  { %5030 = vmatprep.subr.bf16.mxu0 %v6468_v54 }
 0x2a3   :  { %5031 = vmatpush3.bf16.msra.mxu0 %v5693_v57  ;;  %v5719_v57 = vld [vmem:[%s7060_s3 + $0xb8] sm:$0xff]  }
 0x2a4   :  { %5032 = vmatprep.subr.bf16.mxu0 %v6468_v54 }
 0x2a6   :  { %5013 = vmatmul.mubr.bf16.gmra.mrb[84].mxu0 %v1632_v4  ;;  %v5721_v4 = vld [vmem:[%s7060_s3 + $0xc8] sm:$0xff]  }
 0x2a7   :  { %5016 = vmatprep.mubr.msk.bf16.mxu0 %vm5828_vm0, %v6468_v54  ;;  %5033 = vmatpush3.bf16.msra.mxu0 %v5694_v2 }
 0x2a8   :  { %5034 = vmatprep.subr.bf16.mxu0 %v6468_v54 }
 0x2ab   :  { %5035 = vmatpush3.bf16.msra.mxu0 %v5695_v6  ;;  %v5723_v6 = vld [vmem:[%s7060_s3 + $0xd8] sm:$0xff]  }
 0x2ae   :  { %5017 = vmatmul.mubr.bf16.gmra.mrb[88].mxu0 %v1633_v7  ;;  %v5724_v7 = vld [vmem:[%s7060_s3 + $0xe0] sm:$0xff]  }
 0x2af   :  { %5036 = vmatprep.mubr.msk.bf16.mxu0 %vm5828_vm0, %v6468_v54 }
 0x2b6   :  { %5037 = vmatmul.mubr.bf16.vlgmr.msra.gmra.mrb[72].mxu0 %v1789_v48  ;;  %v5697_v48 = vld [vmem:[%s7060_s3 + $0x48] sm:$0xff]  }
 0x2b7   :  { %5040 = vmatprep.mubr.msk.bf16.mxu0 %vm5828_vm0, %v6468_v54  ;;  %5059 = vmatpush3.bf16.msra.mxu1 %v5697_v48  ;;  %v5727_v48 = vld [vmem:[%s7060_s3 + $0xf8] sm:$0xff]  }
 0x2b8   :  { %5060 = vmatprep.subr.bf16.mxu1 %v6468_v54 }
 0x2bb   :  { %5061 = vmatpush3.bf16.msra.mxu1 %v5698_v62 }
 0x2bc   :  { %5062 = vmatprep.subr.bf16.mxu1 %v6468_v54 }
 0x2be   :  { %5041 = vmatmul.mubr.bf16.gmra.mrb[76].mxu0 %v1790_v3  ;;  %v5700_v3 = vld [vmem:[%s7060_s3 + $0x60] sm:$0xff]  }
 0x2bf   :  { %5044 = vmatprep.mubr.msk.bf16.mxu0 %vm5828_vm0, %v6468_v54  ;;  %5063 = vmatpush3.bf16.msra.mxu1 %v5699_v63  ;;  %v5728_v63 = vld [vmem:[%s7060_s3 + $0x100] sm:$0xff]  }
 0x2c0   :  { %5064 = vmatprep.subr.bf16.mxu1 %v6468_v54 }
 0x2c3   :  { %5065 = vmatpush3.bf16.msra.mxu1 %v5700_v3 }
 0x2c4   :  { %5066 = vmatprep.subr.bf16.mxu1 %v6468_v54 }
 0x2c6   :  { %5045 = vmatmul.mubr.bf16.gmra.mrb[80].mxu0 %v1791_v13  ;;  %v5703_v13 = vld [vmem:[%s7060_s3 + $0x78] sm:$0xff]  }
 0x2c7   :  { %5048 = vmatprep.mubr.msk.bf16.mxu0 %vm5828_vm0, %v6468_v54  ;;  %5067 = vmatpush3.bf16.msra.mxu1 %v5701_v10  ;;  %v5729_v10 = vld [vmem:[%s7060_s3 + $0x108] sm:$0xff]  }
 0x2c8   :  { %5068 = vmatprep.subr.bf16.mxu1 %v6468_v54 }
 0x2cb   :  { %5069 = vmatpush3.bf16.msra.mxu1 %v5702_v12  ;;  %v5730_v12 = vld [vmem:[%s7060_s3 + $0x110] sm:$0xff]  }
 0x2cc   :  { %5070 = vmatprep.subr.bf16.mxu1 %v6468_v54 }
 0x2ce   :  { %5049 = vmatmul.mubr.bf16.gmra.mrb[84].mxu0 %v1792_v24 }
 0x2cf   :  { %5052 = vmatprep.mubr.msk.bf16.mxu0 %vm5828_vm0, %v6468_v54  ;;  %5071 = vmatpush3.bf16.msra.mxu1 %v5703_v13  ;;  %v5731_v13 = vld [vmem:[%s7060_s3 + $0x118] sm:$0xff]  }
 0x2d0   :  { %5076 = vmatprep.subr.bf16.mxu1 %v6468_v54 }
 0x2d6   :  { %5053 = vmatmul.mubr.bf16.gmra.mrb[88].mxu0 %v1793_v45  ;;  %v5726_v45 = vld [vmem:[%s7060_s3 + $0xf0] sm:$0xff]  }
 0x389   :  { %v1893_v22 = vpop.f32.mrb[72].mxu0 }
 0x38a   :  { %v1976_v23 = vmax.f32 %v1893_v22, 0.0  ;;  %v5038_v24 = vpop.f32.mrb[73].mxu0  ;;  %v5732_v22 = vld [vmem:[%s7060_s3 + $0x120] sm:$0xff]  }
 0x38b   :  { %v1896_v16 = vpop.f32.mrb[74].mxu0  ;;  %v5734_v24 = vld [vmem:[%s7060_s3 + $0x130] sm:$0xff]  }
 0x38c   :  { %1985 = vst [vmem:[#allocation3] sm:$0xff] %v1976_v23  ;;  %v1977_v19 = vmax.f32 %v1896_v16, 0.0  ;;  %v5039_v21 = vpop.f32.mrb[75].mxu0  ;;  %v5733_v23 = vld [vmem:[%s7060_s3 + $0x128] sm:$0xff]   ;;  %v5735_v16 = vld [vmem:[%s7060_s3 + $0x138] sm:$0xff]  }
 0x38d   :  { %v5736_v21 = vld [vmem:[%s7060_s3 + $0x140] sm:$0xff]  }
 0x38e   :  { %1986 = vst [vmem:[#allocation3 + $0x8] sm:$0xff] %v1977_v19 }
 0x391   :  { %v1901_v26 = vpop.f32.mrb[76].mxu0 }
 0x392   :  { %v1978_v29 = vmax.f32 %v1901_v26, 0.0  ;;  %v5042_v35 = vpop.f32.mrb[77].mxu0 }
 0x393   :  { %v1904_v41 = vpop.f32.mrb[78].mxu0  ;;  %v5738_v35 = vld [vmem:[%s7060_s3 + $0x150] sm:$0xff]  }
 0x394   :  { %1987 = vst [vmem:[#allocation3 + $0x10] sm:$0xff] %v1978_v29  ;;  %v5043_v46 = vpop.f32.mrb[79].mxu0  ;;  %v5737_v29 = vld [vmem:[%s7060_s3 + $0x148] sm:$0xff]   ;;  %v5739_v41 = vld [vmem:[%s7060_s3 + $0x158] sm:$0xff]  }
 0x395   :  { %v5740_v46 = vld [vmem:[%s7060_s3 + $0x160] sm:$0xff]  }
 0x399   :  { %v1909_v53 = vpop.f32.mrb[80].mxu0 }
 0x39a   :  { %v1980_v0 = vmax.f32 %v1909_v53, 0.0  ;;  %v5046_v1 = vpop.f32.mrb[81].mxu0  ;;  %v5741_v53 = vld [vmem:[%s7060_s3 + $0x168] sm:$0xff]  }
 0x39b   :  { %v1912_v8 = vpop.f32.mrb[82].mxu0  ;;  %v5743_v1 = vld [vmem:[%s7060_s3 + $0x178] sm:$0xff]  }
 0x39c   :  { %1989 = vst [vmem:[#allocation3 + $0x20] sm:$0xff] %v1980_v0  ;;  %v1981_v9 = vmax.f32 %v1912_v8, 0.0  ;;  %v5047_v14 = vpop.f32.mrb[83].mxu0  ;;  %v5742_v0 = vld [vmem:[%s7060_s3 + $0x170] sm:$0xff]  }
 0x39e   :  { %1990 = vst [vmem:[#allocation3 + $0x28] sm:$0xff] %v1981_v9  ;;  %v5744_v9 = vld [vmem:[%s7060_s3 + $0x180] sm:$0xff]  }
 0x3a1   :  { %v1917_v15 = vpop.f32.mrb[84].mxu0 }
 0x3a2   :  { %v1982_v17 = vmax.f32 %v1917_v15, 0.0  ;;  %v5050_v18 = vpop.f32.mrb[85].mxu0  ;;  %v5745_v15 = vld [vmem:[%s7060_s3 + $0x188] sm:$0xff]  }
 0x3a3   :  { %v1920_v25 = vpop.f32.mrb[86].mxu0  ;;  %v2013_v27 = vld [vmem:[#allocation3 + $0x1] ss:$36 sm:$0xff]  ;;  %v1994_v47 = vld [vmem:[#allocation3] ss:$36 sm:$0xff] }
 0x3a4   :  { %1991 = vst [vmem:[#allocation3 + $0x30] sm:$0xff] %v1982_v17  ;;  %v1983_v31 = vmax.f32 %v1920_v25, 0.0  ;;  %v5051_v32 = vpop.f32.mrb[87].mxu0  ;;  %v2014_v33 = vpack.c.bf16 %v2013_v27, %v2013_v27  ;;  %v1995_v50 = vpack.c.bf16 %v1994_v47, %v1994_v47  ;;  %v2209_v60 = vld [vmem:[#allocation3 + $0x2] ss:$36 sm:$0xff] }
 0x3a5   :  { %v2210_v2 = vpack.c.bf16 %v2209_v60, %v2209_v60  ;;  %v2318_v62 = vld [vmem:[#allocation3 + $0x3] ss:$36 sm:$0xff]  ;;  %v2427_v19 = vld [vmem:[#allocation3 + $0x6] ss:$36 sm:$0xff]  ;;  %v2645_v32 = vld [vmem:[#allocation3 + $0x8] ss:$36 sm:$0xff] }
 0x3a6   :  { %1992 = vst [vmem:[#allocation3 + $0x38] sm:$0xff] %v1983_v31  ;;  %5073 = vmatmul.mubr.bf16.vlgmr.msra.gmra.mrb[0].mxu1 %v2014_v33  ;;  %v2319_v3 = vpack.c.bf16 %v2318_v62, %v2318_v62  ;;  %v2428_v26 = vpack.c.bf16 %v2427_v19, %v2427_v19  ;;  %v2536_v8 = vld [vmem:[#allocation3 + $0x7] ss:$36 sm:$0xff] }
 0x3a7   :  { %5077 = vmatpush3.bf16.msra.mxu1 %v5704_v28  ;;  %5092 = vmatprep.mubr.msk.bf16.mxu1 %vm5828_vm0, %v6468_v54  ;;  %v2537_v14 = vpack.c.bf16 %v2536_v8, %v2536_v8  ;;  %v5746_v17 = vld [vmem:[%s7060_s3 + $0x190] sm:$0xff]   ;;  %v5747_v18 = vld [vmem:[%s7060_s3 + $0x198] sm:$0xff]   ;;  %v5748_v25 = vld [vmem:[%s7060_s3 + $0x1a0] sm:$0xff]  }
 0x3a8   :  { %5078 = vmatprep.subr.bf16.mxu1 %v6468_v54  ;;  %v5749_v27 = vld [vmem:[%s7060_s3 + $0x1a8] sm:$0xff]   ;;  %v5750_v28 = vld [vmem:[%s7060_s3 + $0x1b0] sm:$0xff]   ;;  %v5751_v31 = vld [vmem:[%s7060_s3 + $0x1b8] sm:$0xff]  }
 0x3a9   :  { %v1925_v20 = vpop.f32.mrb[88].mxu0  ;;  %v5752_v33 = vld [vmem:[%s7060_s3 + $0x1c0] sm:$0xff]   ;;  %v5761_v47 = vld [vmem:[%s7060_s3 + $0x208] sm:$0xff]  }
 0x3aa   :  { %v5054_v30 = vpop.f32.mrb[89].mxu0  ;;  %v5753_v20 = vld [vmem:[%s7060_s3 + $0x1c8] sm:$0xff]  }
 0x3ab   :  { %5079 = vmatpush3.bf16.msra.mxu1 %v5705_v11  ;;  %v1928_v34 = vpop.f32.mrb[90].mxu0  ;;  %v2646_v11 = vpack.c.bf16 %v2645_v32, %v2645_v32  ;;  %v5754_v30 = vld [vmem:[%s7060_s3 + $0x1d0] sm:$0xff]   ;;  %v5769_v60 = vld [vmem:[%s7060_s3 + $0x248] sm:$0xff]  }
 0x3ac   :  { %v5055_v37 = vpop.f32.mrb[91].mxu0  ;;  %5080 = vmatprep.subr.bf16.mxu1 %v6468_v54  ;;  %v5755_v34 = vld [vmem:[%s7060_s3 + $0x1d8] sm:$0xff]   ;;  %v5777_v62 = vld [vmem:[%s7060_s3 + $0x288] sm:$0xff]  }
 0x3ad   :  { %v5757_v37 = vld [vmem:[%s7060_s3 + $0x1e8] sm:$0xff]  }
 0x3ae   :  { %v5785_v19 = vld [vmem:[%s7060_s3 + $0x2c8] sm:$0xff]  }
 0x3af   :  { %5081 = vmatpush3.bf16.msra.mxu1 %v5706_v36  ;;  %v5756_v36 = vld [vmem:[%s7060_s3 + $0x1e0] sm:$0xff]   ;;  %v5793_v8 = vld [vmem:[%s7060_s3 + $0x308] sm:$0xff]  }
 0x3b0   :  { %5082 = vmatprep.subr.bf16.mxu1 %v6468_v54  ;;  %v5801_v32 = vld [vmem:[%s7060_s3 + $0x348] sm:$0xff]  }
 0x3b3   :  { %5083 = vmatpush3.bf16.msra.mxu1 %v5707_v38  ;;  %v5758_v38 = vld [vmem:[%s7060_s3 + $0x1f0] sm:$0xff]  }
 0x3b4   :  { %5084 = vmatprep.subr.bf16.mxu1 %v6468_v54 }
 0x3b7   :  { %5085 = vmatpush3.bf16.msra.mxu1 %v5708_v39  ;;  %v5759_v39 = vld [vmem:[%s7060_s3 + $0x1f8] sm:$0xff]  }
 0x3b8   :  { %5086 = vmatprep.subr.bf16.mxu1 %v6468_v54 }
 0x3bb   :  { %5087 = vmatpush3.bf16.msra.mxu1 %v5709_v40  ;;  %v2754_v40 = vld [vmem:[#allocation3 + $0x9] ss:$36 sm:$0xff] }
 0x3bc   :  { %5088 = vmatprep.subr.bf16.mxu1 %v6468_v54 }
 0x3bf   :  { %5089 = vmatpush3.bf16.msra.mxu1 %v5710_v42  ;;  %v5760_v42 = vld [vmem:[%s7060_s3 + $0x200] sm:$0xff]  }
 0x3c0   :  { %5090 = vmatprep.subr.bf16.mxu1 %v6468_v54 }
 0x3c3   :  { %5091 = vmatpush3.bf16.msra.mxu1 %v5711_v43  ;;  %v2755_v43 = vpack.c.bf16 %v2754_v40, %v2754_v40  ;;  %v5809_v40 = vld [vmem:[%s7060_s3 + $0x388] sm:$0xff]  }
 0x3c4   :  { %5096 = vmatprep.subr.bf16.mxu1 %v6468_v54 }
 0x3c6   :  { %5093 = vmatmul.mubr.bf16.vlgmr.msra.gmra.mrb[0].mxu1 %v1995_v50  ;;  %v5763_v50 = vld [vmem:[%s7060_s3 + $0x218] sm:$0xff]  }
 0x3c7   :  { %5097 = vmatpush3.bf16.msra.mxu1 %v5712_v49  ;;  %5112 = vmatprep.mubr.msk.bf16.mxu1 %vm5828_vm0, %v6468_v54  ;;  %v5762_v49 = vld [vmem:[%s7060_s3 + $0x210] sm:$0xff]  }
 0x3c8   :  { %5098 = vmatprep.subr.bf16.mxu1 %v6468_v54 }
 0x3cb   :  { %5099 = vmatpush3.bf16.msra.mxu1 %v5713_v51  ;;  %v5764_v51 = vld [vmem:[%s7060_s3 + $0x220] sm:$0xff]  }
 0x3cc   :  { %5100 = vmatprep.subr.bf16.mxu1 %v6468_v54 }
 0x3cf   :  { %5101 = vmatpush3.bf16.msra.mxu1 %v5714_v52  ;;  %v5765_v52 = vld [vmem:[%s7060_s3 + $0x228] sm:$0xff]  }
 0x3d0   :  { %5102 = vmatprep.subr.bf16.mxu1 %v6468_v54 }
 0x3d3   :  { %5103 = vmatpush3.bf16.msra.mxu1 %v5715_v55  ;;  %v5766_v55 = vld [vmem:[%s7060_s3 + $0x230] sm:$0xff]  }
 0x3d4   :  { %5104 = vmatprep.subr.bf16.mxu1 %v6468_v54 }
 0x3d7   :  { %5105 = vmatpush3.bf16.msra.mxu1 %v5716_v56  ;;  %v5767_v56 = vld [vmem:[%s7060_s3 + $0x238] sm:$0xff]  }
 0x3d8   :  { %5106 = vmatprep.subr.bf16.mxu1 %v6468_v54 }
 0x3db   :  { %5107 = vmatpush3.bf16.msra.mxu1 %v5717_v58  ;;  %v2863_v58 = vld [vmem:[#allocation3 + $0xc] ss:$36 sm:$0xff] }
 0x3dc   :  { %5108 = vmatprep.subr.bf16.mxu1 %v6468_v54 }
 0x3df   :  { %5109 = vmatpush3.bf16.msra.mxu1 %v5718_v59  ;;  %v5768_v59 = vld [vmem:[%s7060_s3 + $0x240] sm:$0xff]  }
 0x3e0   :  { %5110 = vmatprep.subr.bf16.mxu1 %v6468_v54 }
 0x3e3   :  { %5111 = vmatpush3.bf16.msra.mxu1 %v5719_v57  ;;  %v2864_v57 = vpack.c.bf16 %v2863_v58, %v2863_v58  ;;  %v5817_v58 = vld [vmem:[%s7060_s3 + $0x3c8] sm:$0xff]  }
 0x3e4   :  { %5116 = vmatprep.subr.bf16.mxu1 %v6468_v54 }
 0x3e6   :  { %5113 = vmatmul.mubr.bf16.vlgmr.msra.gmra.mrb[0].mxu1 %v2210_v2  ;;  %v5771_v2 = vld [vmem:[%s7060_s3 + $0x258] sm:$0xff]  }
 0x3e7   :  { %5117 = vmatpush3.bf16.msra.mxu1 %v5720_v61  ;;  %5132 = vmatprep.mubr.msk.bf16.mxu1 %vm5828_vm0, %v6468_v54  ;;  %v5770_v61 = vld [vmem:[%s7060_s3 + $0x250] sm:$0xff]  }
 0x3e8   :  { %5118 = vmatprep.subr.bf16.mxu1 %v6468_v54 }
 0x3eb   :  { %5119 = vmatpush3.bf16.msra.mxu1 %v5721_v4  ;;  %v5772_v4 = vld [vmem:[%s7060_s3 + $0x260] sm:$0xff]  }
 0x3ec   :  { %5120 = vmatprep.subr.bf16.mxu1 %v6468_v54 }
 0x3ef   :  { %5121 = vmatpush3.bf16.msra.mxu1 %v5722_v5  ;;  %v5773_v5 = vld [vmem:[%s7060_s3 + $0x268] sm:$0xff]  }
 0x3f0   :  { %5122 = vmatprep.subr.bf16.mxu1 %v6468_v54 }
 0x3f3   :  { %5123 = vmatpush3.bf16.msra.mxu1 %v5723_v6  ;;  %v5774_v6 = vld [vmem:[%s7060_s3 + $0x270] sm:$0xff]  }
 0x3f4   :  { %5124 = vmatprep.subr.bf16.mxu1 %v6468_v54 }
 0x3f7   :  { %5125 = vmatpush3.bf16.msra.mxu1 %v5724_v7  ;;  %v5775_v7 = vld [vmem:[%s7060_s3 + $0x278] sm:$0xff]  }
 0x3f8   :  { %5126 = vmatprep.subr.bf16.mxu1 %v6468_v54 }
 0x3fb   :  { %5127 = vmatpush3.bf16.msra.mxu1 %v5725_v44  ;;  %v2972_v44 = vld [vmem:[#allocation3 + $0xd] ss:$36 sm:$0xff] }
 0x3fc   :  { %5128 = vmatprep.subr.bf16.mxu1 %v6468_v54 }
 0x3ff   :  { %5129 = vmatpush3.bf16.msra.mxu1 %v5726_v45  ;;  %v5776_v45 = vld [vmem:[%s7060_s3 + $0x280] sm:$0xff]  }
 0x400   :  { %5130 = vmatprep.subr.bf16.mxu1 %v6468_v54 }
 0x403   :  { %5131 = vmatpush3.bf16.msra.mxu1 %v5727_v48  ;;  %v2973_v48 = vpack.c.bf16 %v2972_v44, %v2972_v44 }
 0x404   :  { %5136 = vmatprep.subr.bf16.mxu1 %v6468_v54 }
 0x406   :  { %5133 = vmatmul.mubr.bf16.vlgmr.msra.gmra.mrb[0].mxu1 %v2319_v3  ;;  %v5779_v3 = vld [vmem:[%s7060_s3 + $0x298] sm:$0xff]  }
 0x407   :  { %5137 = vmatpush3.bf16.msra.mxu1 %v5728_v63  ;;  %5152 = vmatprep.mubr.msk.bf16.mxu1 %vm5828_vm0, %v6468_v54  ;;  %v5778_v63 = vld [vmem:[%s7060_s3 + $0x290] sm:$0xff]  }
 0x408   :  { %5138 = vmatprep.subr.bf16.mxu1 %v6468_v54 }
 0x40b   :  { %5139 = vmatpush3.bf16.msra.mxu1 %v5729_v10  ;;  %v5780_v10 = vld [vmem:[%s7060_s3 + $0x2a0] sm:$0xff]  }
 0x40c   :  { %5140 = vmatprep.subr.bf16.mxu1 %v6468_v54 }
 0x40f   :  { %5141 = vmatpush3.bf16.msra.mxu1 %v5730_v12  ;;  %v5781_v12 = vld [vmem:[%s7060_s3 + $0x2a8] sm:$0xff]  }
 0x410   :  { %5142 = vmatprep.subr.bf16.mxu1 %v6468_v54 }
 0x413   :  { %5143 = vmatpush3.bf16.msra.mxu1 %v5731_v13  ;;  %v5782_v13 = vld [vmem:[%s7060_s3 + $0x2b0] sm:$0xff]  }
 0x414   :  { %5144 = vmatprep.subr.bf16.mxu1 %v6468_v54 }
 0x417   :  { %5145 = vmatpush3.bf16.msra.mxu1 %v5732_v22  ;;  %v5783_v22 = vld [vmem:[%s7060_s3 + $0x2b8] sm:$0xff]  }
 0x418   :  { %5146 = vmatprep.subr.bf16.mxu1 %v6468_v54 }
 0x41b   :  { %5147 = vmatpush3.bf16.msra.mxu1 %v5733_v23  ;;  %v3081_v23 = vld [vmem:[#allocation3 + $0xe] ss:$36 sm:$0xff] }
 0x41c   :  { %5148 = vmatprep.subr.bf16.mxu1 %v6468_v54 }
 0x41f   :  { %5149 = vmatpush3.bf16.msra.mxu1 %v5734_v24  ;;  %v5784_v24 = vld [vmem:[%s7060_s3 + $0x2c0] sm:$0xff]  }
 0x420   :  { %5150 = vmatprep.subr.bf16.mxu1 %v6468_v54 }
 0x423   :  { %5151 = vmatpush3.bf16.msra.mxu1 %v5735_v16  ;;  %v3082_v16 = vpack.c.bf16 %v3081_v23, %v3081_v23 }
 0x424   :  { %5156 = vmatprep.subr.bf16.mxu1 %v6468_v54 }
 0x426   :  { %5153 = vmatmul.mubr.bf16.vlgmr.msra.gmra.mrb[0].mxu1 %v2428_v26  ;;  %v5787_v26 = vld [vmem:[%s7060_s3 + $0x2d8] sm:$0xff]  }
 0x427   :  { %5157 = vmatpush3.bf16.msra.mxu1 %v5736_v21  ;;  %5172 = vmatprep.mubr.msk.bf16.mxu1 %vm5828_vm0, %v6468_v54  ;;  %v5786_v21 = vld [vmem:[%s7060_s3 + $0x2d0] sm:$0xff]  }
 0x428   :  { %5158 = vmatprep.subr.bf16.mxu1 %v6468_v54 }
 0x42b   :  { %5159 = vmatpush3.bf16.msra.mxu1 %v5737_v29  ;;  %v5788_v29 = vld [vmem:[%s7060_s3 + $0x2e0] sm:$0xff]  }
 0x42c   :  { %5160 = vmatprep.subr.bf16.mxu1 %v6468_v54 }
 0x42f   :  { %5161 = vmatpush3.bf16.msra.mxu1 %v5738_v35  ;;  %v5789_v35 = vld [vmem:[%s7060_s3 + $0x2e8] sm:$0xff]  }
 0x430   :  { %5162 = vmatprep.subr.bf16.mxu1 %v6468_v54 }
 0x433   :  { %5163 = vmatpush3.bf16.msra.mxu1 %v5739_v41  ;;  %v5790_v41 = vld [vmem:[%s7060_s3 + $0x2f0] sm:$0xff]  }
 0x434   :  { %5164 = vmatprep.subr.bf16.mxu1 %v6468_v54 }
 0x437   :  { %5165 = vmatpush3.bf16.msra.mxu1 %v5740_v46  ;;  %v5791_v46 = vld [vmem:[%s7060_s3 + $0x2f8] sm:$0xff]  }
 0x438   :  { %5166 = vmatprep.subr.bf16.mxu1 %v6468_v54 }
 0x43b   :  { %5167 = vmatpush3.bf16.msra.mxu1 %v5741_v53  ;;  %v3190_v53 = vld [vmem:[#allocation3 + $0xf] ss:$36 sm:$0xff] }
 0x43c   :  { %5168 = vmatprep.subr.bf16.mxu1 %v6468_v54 }
 0x43f   :  { %5169 = vmatpush3.bf16.msra.mxu1 %v5742_v0  ;;  %v5792_v0 = vld [vmem:[%s7060_s3 + $0x300] sm:$0xff]  }
 0x440   :  { %5170 = vmatprep.subr.bf16.mxu1 %v6468_v54 }
 0x443   :  { %5171 = vmatpush3.bf16.msra.mxu1 %v5743_v1  ;;  %v3191_v1 = vpack.c.bf16 %v3190_v53, %v3190_v53 }
 0x444   :  { %5176 = vmatprep.subr.bf16.mxu1 %v6468_v54 }
 0x446   :  { %5173 = vmatmul.mubr.bf16.vlgmr.msra.gmra.mrb[0].mxu1 %v2537_v14  ;;  %v5795_v14 = vld [vmem:[%s7060_s3 + $0x318] sm:$0xff]  }
 0x447   :  { %5177 = vmatpush3.bf16.msra.mxu1 %v5744_v9  ;;  %5192 = vmatprep.mubr.msk.bf16.mxu1 %vm5828_vm0, %v6468_v54  ;;  %v5794_v9 = vld [vmem:[%s7060_s3 + $0x310] sm:$0xff]  }
 0x448   :  { %5178 = vmatprep.subr.bf16.mxu1 %v6468_v54 }
 0x44b   :  { %5179 = vmatpush3.bf16.msra.mxu1 %v5745_v15  ;;  %v5796_v15 = vld [vmem:[%s7060_s3 + $0x320] sm:$0xff]  }
 0x44c   :  { %5180 = vmatprep.subr.bf16.mxu1 %v6468_v54 }
 0x44f   :  { %5181 = vmatpush3.bf16.msra.mxu1 %v5746_v17  ;;  %v5797_v17 = vld [vmem:[%s7060_s3 + $0x328] sm:$0xff]  }
 0x450   :  { %5182 = vmatprep.subr.bf16.mxu1 %v6468_v54 }
 0x453   :  { %5183 = vmatpush3.bf16.msra.mxu1 %v5747_v18  ;;  %v5798_v18 = vld [vmem:[%s7060_s3 + $0x330] sm:$0xff]  }
 0x454   :  { %5184 = vmatprep.subr.bf16.mxu1 %v6468_v54 }
 0x457   :  { %5185 = vmatpush3.bf16.msra.mxu1 %v5748_v25  ;;  %v5799_v25 = vld [vmem:[%s7060_s3 + $0x338] sm:$0xff]  }
 0x458   :  { %5186 = vmatprep.subr.bf16.mxu1 %v6468_v54 }
 0x45b   :  { %5187 = vmatpush3.bf16.msra.mxu1 %v5749_v27  ;;  %v3299_v27 = vld [vmem:[#allocation3 + $0x12] ss:$36 sm:$0xff] }
 0x45c   :  { %5188 = vmatprep.subr.bf16.mxu1 %v6468_v54 }
 0x45f   :  { %5189 = vmatpush3.bf16.msra.mxu1 %v5750_v28  ;;  %v5800_v28 = vld [vmem:[%s7060_s3 + $0x340] sm:$0xff]  }
 0x460   :  { %5190 = vmatprep.subr.bf16.mxu1 %v6468_v54 }
 0x463   :  { %5191 = vmatpush3.bf16.msra.mxu1 %v5751_v31  ;;  %v3300_v31 = vpack.c.bf16 %v3299_v27, %v3299_v27 }
 0x464   :  { %5196 = vmatprep.subr.bf16.mxu1 %v6468_v54 }
 0x466   :  { %5193 = vmatmul.mubr.bf16.vlgmr.msra.gmra.mrb[0].mxu1 %v2646_v11  ;;  %v5803_v11 = vld [vmem:[%s7060_s3 + $0x358] sm:$0xff]  }
 0x467   :  { %5197 = vmatpush3.bf16.msra.mxu1 %v5752_v33  ;;  %5212 = vmatprep.mubr.msk.bf16.mxu1 %vm5828_vm0, %v6468_v54  ;;  %v5802_v33 = vld [vmem:[%s7060_s3 + $0x350] sm:$0xff]  }
 0x468   :  { %5198 = vmatprep.subr.bf16.mxu1 %v6468_v54 }
 0x46b   :  { %5199 = vmatpush3.bf16.msra.mxu1 %v5753_v20  ;;  %v6967_v20 = vld [vmem:[#allocation2 + $0x48] sm:$0xff] }
 0x46c   :  { %5200 = vmatprep.subr.bf16.mxu1 %v6468_v54 }
 0x46f   :  { %5201 = vmatpush3.bf16.msra.mxu1 %v5754_v30  ;;  %v5804_v30 = vld [vmem:[%s7060_s3 + $0x360] sm:$0xff]  }
 0x470   :  { %5202 = vmatprep.subr.bf16.mxu1 %v6468_v54 }
 0x473   :  { %5203 = vmatpush3.bf16.msra.mxu1 %v5755_v34  ;;  %v5806_v34 = vld [vmem:[%s7060_s3 + $0x370] sm:$0xff]  }
 0x474   :  { %5204 = vmatprep.subr.bf16.mxu1 %v6468_v54 }
 0x477   :  { %5205 = vmatpush3.bf16.msra.mxu1 %v5756_v36  ;;  %v5807_v36 = vld [vmem:[%s7060_s3 + $0x378] sm:$0xff]  }
 0x478   :  { %5206 = vmatprep.subr.bf16.mxu1 %v6468_v54 }
 0x47b   :  { %5207 = vmatpush3.bf16.msra.mxu1 %v5757_v37  ;;  %v3408_v37 = vld [vmem:[#allocation3 + $0x13] ss:$36 sm:$0xff] }
 0x47c   :  { %5208 = vmatprep.subr.bf16.mxu1 %v6468_v54 }
 0x47f   :  { %5209 = vmatpush3.bf16.msra.mxu1 %v5758_v38  ;;  %v5808_v38 = vld [vmem:[%s7060_s3 + $0x380] sm:$0xff]  }
 0x480   :  { %5210 = vmatprep.subr.bf16.mxu1 %v6468_v54 }
 0x483   :  { %5211 = vmatpush3.bf16.msra.mxu1 %v5759_v39  ;;  %v3409_v39 = vpack.c.bf16 %v3408_v37, %v3408_v37 }
 0x484   :  { %5216 = vmatprep.subr.bf16.mxu1 %v6468_v54 }
 0x486   :  { %5213 = vmatmul.mubr.bf16.vlgmr.msra.gmra.mrb[0].mxu1 %v2755_v43  ;;  %v5811_v43 = vld [vmem:[%s7060_s3 + $0x398] sm:$0xff]  }
 0x487   :  { %5217 = vmatpush3.bf16.msra.mxu1 %v5760_v42  ;;  %5232 = vmatprep.mubr.msk.bf16.mxu1 %vm5828_vm0, %v6468_v54  ;;  %v5810_v42 = vld [vmem:[%s7060_s3 + $0x390] sm:$0xff]  }
 0x488   :  { %5218 = vmatprep.subr.bf16.mxu1 %v6468_v54 }
 0x48b   :  { %5219 = vmatpush3.bf16.msra.mxu1 %v5761_v47  ;;  %v5812_v47 = vld [vmem:[%s7060_s3 + $0x3a0] sm:$0xff]  }
 0x48c   :  { %5220 = vmatprep.subr.bf16.mxu1 %v6468_v54 }
 0x48f   :  { %5221 = vmatpush3.bf16.msra.mxu1 %v5762_v49  ;;  %v5813_v49 = vld [vmem:[%s7060_s3 + $0x3a8] sm:$0xff]  }
 0x490   :  { %5222 = vmatprep.subr.bf16.mxu1 %v6468_v54 }
 0x493   :  { %5223 = vmatpush3.bf16.msra.mxu1 %v5763_v50  ;;  %v5814_v50 = vld [vmem:[%s7060_s3 + $0x3b0] sm:$0xff]  }
 0x494   :  { %5224 = vmatprep.subr.bf16.mxu1 %v6468_v54 }
 0x497   :  { %5225 = vmatpush3.bf16.msra.mxu1 %v5764_v51  ;;  %v5815_v51 = vld [vmem:[%s7060_s3 + $0x3b8] sm:$0xff]  }
 0x498   :  { %5226 = vmatprep.subr.bf16.mxu1 %v6468_v54 }
 0x49b   :  { %5227 = vmatpush3.bf16.msra.mxu1 %v5765_v52  ;;  %v3517_v52 = vld [vmem:[#allocation3 + $0x14] ss:$36 sm:$0xff] }
 0x49c   :  { %5228 = vmatprep.subr.bf16.mxu1 %v6468_v54 }
 0x49f   :  { %5229 = vmatpush3.bf16.msra.mxu1 %v5766_v55  ;;  %v5816_v55 = vld [vmem:[%s7060_s3 + $0x3c0] sm:$0xff]  }
 0x4a0   :  { %5230 = vmatprep.subr.bf16.mxu1 %v6468_v54 }
 0x4a3   :  { %5231 = vmatpush3.bf16.msra.mxu1 %v5767_v56  ;;  %v3518_v56 = vpack.c.bf16 %v3517_v52, %v3517_v52 }
 0x4a4   :  { %5236 = vmatprep.subr.bf16.mxu1 %v6468_v54 }
 0x4a6   :  { %5233 = vmatmul.mubr.bf16.vlgmr.msra.gmra.mrb[0].mxu1 %v2864_v57  ;;  %v5819_v57 = vld [vmem:[%s7060_s3 + $0x3d8] sm:$0xff]  }
 0x4a7   :  { %5237 = vmatpush3.bf16.msra.mxu1 %v5768_v59  ;;  %5252 = vmatprep.mubr.msk.bf16.mxu1 %vm5828_vm0, %v6468_v54  ;;  %v5818_v59 = vld [vmem:[%s7060_s3 + $0x3d0] sm:$0xff]  }
 0x4a8   :  { %5238 = vmatprep.subr.bf16.mxu1 %v6468_v54 }
 0x4ab   :  { %5239 = vmatpush3.bf16.msra.mxu1 %v5769_v60  ;;  %v5820_v60 = vld [vmem:[%s7060_s3 + $0x3e0] sm:$0xff]  }
 0x4ac   :  { %5240 = vmatprep.subr.bf16.mxu1 %v6468_v54 }
 0x4af   :  { %5241 = vmatpush3.bf16.msra.mxu1 %v5770_v61  ;;  %v5821_v61 = vld [vmem:[%s7060_s3 + $0x3e8] sm:$0xff]  }
 0x4b0   :  { %5242 = vmatprep.subr.bf16.mxu1 %v6468_v54 }
 0x4b3   :  { %5243 = vmatpush3.bf16.msra.mxu1 %v5771_v2  ;;  %v5822_v2 = vld [vmem:[%s7060_s3 + $0x3f0] sm:$0xff]  }
 0x4b4   :  { %5244 = vmatprep.subr.bf16.mxu1 %v6468_v54 }
 0x4b7   :  { %5245 = vmatpush3.bf16.msra.mxu1 %v5772_v4  ;;  %v5823_v4 = vld [vmem:[%s7060_s3 + $0x3f8] sm:$0xff]  }
 0x4b8   :  { %5246 = vmatprep.subr.bf16.mxu1 %v6468_v54 }
 0x4bb   :  { %5247 = vmatpush3.bf16.msra.mxu1 %v5773_v5  ;;  %v3626_v5 = vld [vmem:[#allocation3 + $0x15] ss:$36 sm:$0xff] }
 0x4bc   :  { %5248 = vmatprep.subr.bf16.mxu1 %v6468_v54 }
 0x4bf   :  { %5249 = vmatpush3.bf16.msra.mxu1 %v5774_v6  ;;  %v3627_v6 = vpack.c.bf16 %v3626_v5, %v3626_v5 }
 0x4c0   :  { %5250 = vmatprep.subr.bf16.mxu1 %v6468_v54 }
 0x4c3   :  { %5251 = vmatpush3.bf16.msra.mxu1 %v5775_v7 }
 0x4c4   :  { %5256 = vmatprep.subr.bf16.mxu1 %v6468_v54 }
 0x4c6   :  { %5253 = vmatmul.mubr.bf16.vlgmr.msra.gmra.mrb[0].mxu1 %v2973_v48 }
 0x4c7   :  { %5257 = vmatpush3.bf16.msra.mxu1 %v5776_v45  ;;  %5272 = vmatprep.mubr.msk.bf16.mxu1 %vm5828_vm0, %v6468_v54 }
 0x4c8   :  { %5258 = vmatprep.subr.bf16.mxu1 %v6468_v54 }
 0x4cb   :  { %5259 = vmatpush3.bf16.msra.mxu1 %v5777_v62 }
 0x4cc   :  { %5260 = vmatprep.subr.bf16.mxu1 %v6468_v54 }
 0x4cf   :  { %5261 = vmatpush3.bf16.msra.mxu1 %v5778_v63 }
 0x4d0   :  { %5262 = vmatprep.subr.bf16.mxu1 %v6468_v54 }
 0x4d3   :  { %5263 = vmatpush3.bf16.msra.mxu1 %v5779_v3 }
 0x4d4   :  { %5264 = vmatprep.subr.bf16.mxu1 %v6468_v54 }
 0x4d7   :  { %5265 = vmatpush3.bf16.msra.mxu1 %v5780_v10 }
 0x4d8   :  { %5266 = vmatprep.subr.bf16.mxu1 %v6468_v54 }
 0x4db   :  { %5267 = vmatpush3.bf16.msra.mxu1 %v5781_v12 }
 0x4dc   :  { %5268 = vmatprep.subr.bf16.mxu1 %v6468_v54 }
 0x4df   :  { %5269 = vmatpush3.bf16.msra.mxu1 %v5782_v13 }
 0x4e0   :  { %5270 = vmatprep.subr.bf16.mxu1 %v6468_v54 }
 0x4e3   :  { %5271 = vmatpush3.bf16.msra.mxu1 %v5783_v22 }
 0x4e4   :  { %5276 = vmatprep.subr.bf16.mxu1 %v6468_v54 }
 0x4e6   :  { %5273 = vmatmul.mubr.bf16.vlgmr.msra.gmra.mrb[0].mxu1 %v3082_v16 }
 0x4e7   :  { %5277 = vmatpush3.bf16.msra.mxu1 %v5784_v24  ;;  %5292 = vmatprep.mubr.msk.bf16.mxu1 %vm5828_vm0, %v6468_v54 }
 0x4e8   :  { %5278 = vmatprep.subr.bf16.mxu1 %v6468_v54 }
 0x4eb   :  { %5279 = vmatpush3.bf16.msra.mxu1 %v5785_v19 }
 0x4ec   :  { %5280 = vmatprep.subr.bf16.mxu1 %v6468_v54 }
 0x4ef   :  { %5281 = vmatpush3.bf16.msra.mxu1 %v5786_v21 }
 0x4f0   :  { %5282 = vmatprep.subr.bf16.mxu1 %v6468_v54 }
 0x4f3   :  { %5283 = vmatpush3.bf16.msra.mxu1 %v5787_v26 }
 0x4f4   :  { %5284 = vmatprep.subr.bf16.mxu1 %v6468_v54 }
 0x4f7   :  { %5285 = vmatpush3.bf16.msra.mxu1 %v5788_v29 }
 0x4f8   :  { %5286 = vmatprep.subr.bf16.mxu1 %v6468_v54 }
 0x4fb   :  { %5287 = vmatpush3.bf16.msra.mxu1 %v5789_v35 }
 0x4fc   :  { %5288 = vmatprep.subr.bf16.mxu1 %v6468_v54 }
 0x4ff   :  { %5289 = vmatpush3.bf16.msra.mxu1 %v5790_v41 }
 0x500   :  { %5290 = vmatprep.subr.bf16.mxu1 %v6468_v54 }
 0x503   :  { %5291 = vmatpush3.bf16.msra.mxu1 %v5791_v46 }
 0x504   :  { %5296 = vmatprep.subr.bf16.mxu1 %v6468_v54 }
 0x506   :  { %5293 = vmatmul.mubr.bf16.vlgmr.msra.gmra.mrb[0].mxu1 %v3191_v1 }
 0x507   :  { %5297 = vmatpush3.bf16.msra.mxu1 %v5792_v0  ;;  %5312 = vmatprep.mubr.msk.bf16.mxu1 %vm5828_vm0, %v6468_v54 }
 0x508   :  { %5298 = vmatprep.subr.bf16.mxu1 %v6468_v54 }
 0x50b   :  { %5299 = vmatpush3.bf16.msra.mxu1 %v5793_v8 }
 0x50c   :  { %5300 = vmatprep.subr.bf16.mxu1 %v6468_v54 }
 0x50f   :  { %5301 = vmatpush3.bf16.msra.mxu1 %v5794_v9 }
 0x510   :  { %5302 = vmatprep.subr.bf16.mxu1 %v6468_v54 }
 0x513   :  { %5303 = vmatpush3.bf16.msra.mxu1 %v5795_v14 }
 0x514   :  { %5304 = vmatprep.subr.bf16.mxu1 %v6468_v54 }
 0x517   :  { %5305 = vmatpush3.bf16.msra.mxu1 %v5796_v15 }
 0x518   :  { %5306 = vmatprep.subr.bf16.mxu1 %v6468_v54 }
 0x51b   :  { %5307 = vmatpush3.bf16.msra.mxu1 %v5797_v17 }
 0x51c   :  { %5308 = vmatprep.subr.bf16.mxu1 %v6468_v54 }
 0x51f   :  { %5309 = vmatpush3.bf16.msra.mxu1 %v5798_v18 }
 0x520   :  { %5310 = vmatprep.subr.bf16.mxu1 %v6468_v54 }
 0x523   :  { %5311 = vmatpush3.bf16.msra.mxu1 %v5799_v25 }
 0x524   :  { %5316 = vmatprep.subr.bf16.mxu1 %v6468_v54 }
 0x526   :  { %5313 = vmatmul.mubr.bf16.vlgmr.msra.gmra.mrb[0].mxu1 %v3300_v31 }
 0x527   :  { %5317 = vmatpush3.bf16.msra.mxu1 %v5800_v28  ;;  %5332 = vmatprep.mubr.msk.bf16.mxu1 %vm5828_vm0, %v6468_v54 }
 0x528   :  { %5318 = vmatprep.subr.bf16.mxu1 %v6468_v54 }
 0x52b   :  { %5319 = vmatpush3.bf16.msra.mxu1 %v5801_v32 }
 0x52c   :  { %5320 = vmatprep.subr.bf16.mxu1 %v6468_v54  ;;  %v5805_v54 = vld [vmem:[%s7060_s3 + $0x368] sm:$0xff]  }
 0x52f   :  { %5321 = vmatpush3.bf16.msra.mxu1 %v5802_v33 }
 0x530   :  { %5322 = vmatprep.subr.bf16.mxu1 %v6967_v20 }
 0x533   :  { %5323 = vmatpush3.bf16.msra.mxu1 %v5803_v11 }
 0x534   :  { %5324 = vmatprep.subr.bf16.mxu1 %v6967_v20 }
 0x537   :  { %5325 = vmatpush3.bf16.msra.mxu1 %v5804_v30 }
 0x538   :  { %5326 = vmatprep.subr.bf16.mxu1 %v6967_v20 }
 0x53b   :  { %5327 = vmatpush3.bf16.msra.mxu1 %v5805_v54 }
 0x53c   :  { %5328 = vmatprep.subr.bf16.mxu1 %v6967_v20 }
 0x53f   :  { %5329 = vmatpush3.bf16.msra.mxu1 %v5806_v34 }
 0x540   :  { %5330 = vmatprep.subr.bf16.mxu1 %v6967_v20 }
 0x543   :  { %5331 = vmatpush3.bf16.msra.mxu1 %v5807_v36 }
 0x544   :  { %5336 = vmatprep.subr.bf16.mxu1 %v6967_v20 }
 0x546   :  { %5333 = vmatmul.mubr.bf16.vlgmr.msra.gmra.mrb[0].mxu1 %v3409_v39 }
 0x547   :  { %5337 = vmatpush3.bf16.msra.mxu1 %v5808_v38  ;;  %5352 = vmatprep.mubr.msk.bf16.mxu1 %vm5828_vm0, %v6967_v20 }
 0x548   :  { %5338 = vmatprep.subr.bf16.mxu1 %v6967_v20 }
 0x54b   :  { %5339 = vmatpush3.bf16.msra.mxu1 %v5809_v40 }
 0x54c   :  { %5340 = vmatprep.subr.bf16.mxu1 %v6967_v20 }
 0x54f   :  { %5341 = vmatpush3.bf16.msra.mxu1 %v5810_v42 }
 0x550   :  { %5342 = vmatprep.subr.bf16.mxu1 %v6967_v20 }
 0x553   :  { %5343 = vmatpush3.bf16.msra.mxu1 %v5811_v43 }
 0x554   :  { %5344 = vmatprep.subr.bf16.mxu1 %v6967_v20 }
 0x557   :  { %5345 = vmatpush3.bf16.msra.mxu1 %v5812_v47 }
 0x558   :  { %5346 = vmatprep.subr.bf16.mxu1 %v6967_v20 }
 0x55b   :  { %5347 = vmatpush3.bf16.msra.mxu1 %v5813_v49 }
 0x55c   :  { %5348 = vmatprep.subr.bf16.mxu1 %v6967_v20 }
 0x55f   :  { %5349 = vmatpush3.bf16.msra.mxu1 %v5814_v50 }
 0x560   :  { %5350 = vmatprep.subr.bf16.mxu1 %v6967_v20 }
 0x563   :  { %5351 = vmatpush3.bf16.msra.mxu1 %v5815_v51 }
 0x564   :  { %5356 = vmatprep.subr.bf16.mxu1 %v6967_v20 }
 0x566   :  { %5353 = vmatmul.mubr.bf16.vlgmr.msra.gmra.mrb[0].mxu1 %v3518_v56 }
 0x567   :  { %5357 = vmatpush3.bf16.msra.mxu1 %v5816_v55  ;;  %5372 = vmatprep.mubr.msk.bf16.mxu1 %vm5828_vm0, %v6967_v20 }
 0x568   :  { %5358 = vmatprep.subr.bf16.mxu1 %v6967_v20 }
 0x56b   :  { %5359 = vmatpush3.bf16.msra.mxu1 %v5817_v58 }
 0x56c   :  { %5360 = vmatprep.subr.bf16.mxu1 %v6967_v20 }
 0x56f   :  { %5361 = vmatpush3.bf16.msra.mxu1 %v5818_v59 }
 0x570   :  { %5362 = vmatprep.subr.bf16.mxu1 %v6967_v20 }
 0x573   :  { %5363 = vmatpush3.bf16.msra.mxu1 %v5819_v57 }
 0x574   :  { %5364 = vmatprep.subr.bf16.mxu1 %v6967_v20 }
 0x577   :  { %5365 = vmatpush3.bf16.msra.mxu1 %v5820_v60 }
 0x578   :  { %5366 = vmatprep.subr.bf16.mxu1 %v6967_v20 }
 0x57b   :  { %5367 = vmatpush3.bf16.msra.mxu1 %v5821_v61 }
 0x57c   :  { %5368 = vmatprep.subr.bf16.mxu1 %v6967_v20 }
 0x57f   :  { %5369 = vmatpush3.bf16.msra.mxu1 %v5822_v2 }
 0x580   :  { %5370 = vmatprep.subr.bf16.mxu1 %v6967_v20 }
 0x583   :  { %5371 = vmatpush3.bf16.msra.mxu1 %v5823_v4 }
 0x586   :  { %5373 = vmatmul.mubr.bf16.vlgmr.msra.gmra.mrb[0].mxu1 %v3627_v6 }
 0x659   :  { %v3727_v7 = vpop.f32.mrb[0].mxu1 }
 0x65a   :  { %3734 = vst [vmem:[%s7061_s4] sm:$0xff] %v3727_v7  ;;  %v5374_v44 = vpop.f32.mrb[1].mxu1 }
 0x65b   :  { %v3730_v45 = vpop.f32.mrb[2].mxu1 }
 0x65c   :  { %v5375_v48 = vpop.f32.mrb[3].mxu1 }

</bundles_post_ra>
